<compile_context>
chip_gen: v6e
topology: v6e:2x2x1
jax: 0.10.0
libtpu: 0.0.40
codegen_flags: <defaults>
</compile_context>

<pallas_src>
import numpy as np
import jax
import jax.numpy as jnp
from jax.experimental import pallas as pl
from jax.experimental.pallas import tpu as pltpu

NUM_CLASSES = 11
LANE = 128
SUBLANE = 8


def _hardsigmoid(x):
    # PyTorch nn.Hardsigmoid: clip(x / 6 + 0.5, 0, 1); multiply by reciprocal (no divide).
    return jnp.clip(x * (1.0 / 6.0) + 0.5, 0.0, 1.0)


def _round_up(v, m):
    return ((v + m - 1) // m) * m


# ----------------------------------------------------------------------------- kernel
def tt_gru_kernel(x_ref, wx_ref, b_ref, whzr_ref, whh_ref, wc_ref, bc_ref,
                  out_ref, xp_s):
    Bp = out_ref.shape[0]             # padded batch (multiple of 8)
    T = x_ref.shape[0] // Bp          # number of timesteps (static)
    Up = whh_ref.shape[0]             # padded gate width (128)

    # ---- hoisted, time-parallel fused input projection: one bf16 matmul, f32 accumulate ----
    xp_s[...] = (jnp.dot(x_ref[...], wx_ref[...], preferred_element_type=jnp.float32)
                 + b_ref[...])                                           # (T*Bp, 3*Up)

    # ---- sequential GRU recurrence over time, hidden state carried in registers ----
    h0 = jnp.zeros((Bp, Up), jnp.float32)

    def step(t, h):
        row = pl.multiple_of(t * Bp, SUBLANE)
        xzrh = xp_s[pl.ds(row, Bp), :]                                   # (Bp, 3*Up) f32
        x_z = xzrh[:, :Up]
        x_r = xzrh[:, Up:2 * Up]
        x_h = xzrh[:, 2 * Up:]

        h_bf = h.astype(jnp.bfloat16)
        rec_zr = jnp.dot(h_bf, whzr_ref[...],
                         preferred_element_type=jnp.float32)             # (Bp, 2*Up)
        z = _hardsigmoid(x_z + rec_zr[:, :Up])
        r = _hardsigmoid(x_r + rec_zr[:, Up:])

        rec_h = jnp.dot((r * h).astype(jnp.bfloat16), whh_ref[...],
                        preferred_element_type=jnp.float32)
        hh = jnp.tanh(x_h + rec_h)
        return z * h + (1.0 - z) * hh

    h = jax.lax.fori_loop(0, T, step, h0, unroll=True)

    # ---- classifier on the final hidden state (lane-padded output, unmasked store) ----
    out_ref[...] = (jnp.dot(h.astype(jnp.bfloat16), wc_ref[...],
                            preferred_element_type=jnp.float32) + bc_ref[...])


# ---------------------------------------------------------------------------- wrapper
def tt_gru_forward(x, w_eff, bias, recurrent_kernel, cls_w, cls_b, units):
    B, T, N = x.shape
    U = units
    Bp = _round_up(max(B, SUBLANE), SUBLANE)        # batch padded to 8-sublane multiple
    Up = _round_up(max(U, LANE), LANE)              # gate width padded to full 128 lanes
    Cp = _round_up(max(NUM_CLASSES, LANE), LANE)    # classifier lanes padded to 128

    # (B, T, N) -> (T, Bp, N) -> (T*Bp, N) so every matmul LHS is sublane-aligned.
    x_tbn = jnp.transpose(x, (1, 0, 2))
    x_tbn = jnp.pad(x_tbn, ((0, 0), (0, Bp - B), (0, 0)))
    x2d = x_tbn.reshape(T * Bp, N).astype(jnp.bfloat16)

    def pad_cols(a, cols):
        return jnp.pad(a, ((0, 0), (0, cols - a.shape[1])))

    def pad2(a, rows, cols):
        return jnp.pad(a, ((0, rows - a.shape[0]), (0, cols - a.shape[1])))

    # Fused, per-gate lane-aligned weight layout.  Zero padding keeps the padded hidden
    # columns exactly zero through the recurrence, so no correction is needed.
    wxz = pad_cols(w_eff[:, :U], Up)
    wxr = pad_cols(w_eff[:, U:2 * U], Up)
    wxh = pad_cols(w_eff[:, 2 * U:], Up)
    wx = jnp.concatenate([wxz, wxr, wxh], axis=1).astype(jnp.bfloat16)       # (N, 3*Up)

    bz = pad_cols(bias[:U].reshape(1, U), Up)
    br = pad_cols(bias[U:2 * U].reshape(1, U), Up)
    bh = pad_cols(bias[2 * U:].reshape(1, U), Up)
    b = jnp.concatenate([bz, br, bh], axis=1).astype(jnp.float32)            # (1, 3*Up)

    whz = pad2(recurrent_kernel[:, :U], Up, Up)
    whr = pad2(recurrent_kernel[:, U:2 * U], Up, Up)
    whzr = jnp.concatenate([whz, whr], axis=1).astype(jnp.bfloat16)          # (Up, 2*Up)
    whh = pad2(recurrent_kernel[:, 2 * U:], Up, Up).astype(jnp.bfloat16)     # (Up, Up)

    wc = pad2(cls_w, Up, Cp).astype(jnp.bfloat16)                            # (Up, Cp)
    bc = pad_cols(cls_b.reshape(1, -1), Cp).astype(jnp.float32)              # (1, Cp)

    out = pl.pallas_call(
        tt_gru_kernel,
        out_shape=jax.ShapeDtypeStruct((Bp, Cp), jnp.float32),
        in_specs=[pl.BlockSpec(memory_space=pltpu.MemorySpace.VMEM)] * 7,
        out_specs=pl.BlockSpec(memory_space=pltpu.MemorySpace.VMEM),
        scratch_shapes=[
            pltpu.VMEM((T * Bp, 3 * Up), jnp.float32),   # fused x-projection (z | r | h)
        ],
    )(x2d, wx, b, whzr, whh, wc, bc)

    return out[:B, :NUM_CLASSES]


# ---------------------------------------------------------- parameter / W_eff setup (glue)
def make_params(key, tt_input_shape, tt_output_shape, tt_ranks):
    tt_input_shape = np.array(tt_input_shape)
    tt_output_shape = np.array(tt_output_shape)
    tt_ranks = np.array(tt_ranks)
    units = int(np.prod(tt_output_shape))         # computed BEFORE tripling, as in __init__
    tt_output_shape = tt_output_shape.copy()
    tt_output_shape[0] *= 3
    num_dim = len(tt_input_shape)

    k1, k2, k3, k4, k5 = jax.random.split(key, 5)
    total = int(np.sum(tt_input_shape * tt_output_shape * tt_ranks[1:] * tt_ranks[:-1]))
    kernel = jax.random.uniform(k1, (total,), dtype=jnp.float32)                  # torch.rand
    recurrent_kernel = jax.random.uniform(k2, (units, units * 3), dtype=jnp.float32)
    bias = jax.random.uniform(k3, (int(np.prod(tt_output_shape)),), dtype=jnp.float32)
    cls_w = jax.random.uniform(k4, (units, NUM_CLASSES), dtype=jnp.float32) * 0.1
    cls_b = jax.random.uniform(k5, (NUM_CLASSES,), dtype=jnp.float32) * 0.1

    # core slicing, exactly as in __init__
    inds = np.zeros(num_dim, dtype=int)
    shapes = np.zeros((num_dim, 2), dtype=int)
    cores = [None] * num_dim
    for k in range(num_dim - 1, -1, -1):
        shapes[k][0] = tt_input_shape[k] * tt_ranks[k + 1]
        shapes[k][1] = tt_ranks[k] * tt_output_shape[k]
        cores[k] = kernel[inds[k]:inds[k] + int(np.prod(shapes[k]))]
        if 0 < k:
            inds[k - 1] = inds[k] + int(np.prod(shapes[k]))

    # Build the exact dense-equivalent TT weight by pushing an identity batch through the
    # same reshape/matmul/transpose sequence the PyTorch cell() performs.
    N = int(np.prod(tt_input_shape))
    res = jnp.eye(N, dtype=jnp.float32)
    for k in range(num_dim - 1, -1, -1):
        res = res.reshape(-1, int(shapes[k][0])) @ cores[k].reshape(int(shapes[k][0]),
                                                                    int(shapes[k][1]))
        res = res.reshape(-1, int(tt_output_shape[k])).swapaxes(-1, -2)
    w_eff = res.reshape(-1, N).swapaxes(-1, -2)   # (N, 3*units)

    return dict(w_eff=w_eff, bias=bias, recurrent_kernel=recurrent_kernel,
                cls_w=cls_w, cls_b=cls_b, units=units, input_dim=N)


# ------------------------------------------------------------------------ JAX reference
def reference_forward(x, p):
    B, T, N = x.shape
    U = p["units"]
    h = jnp.zeros((B, U), jnp.float32)
    for t in range(T):
        mx = jnp.dot(x[:, t, :], p["w_eff"], precision="highest") + p["bias"]
        mi = jnp.dot(h, p["recurrent_kernel"][:, :2 * U], precision="highest")
        z = _hardsigmoid(mx[:, :U] + mi[:, :U])
        r = _hardsigmoid(mx[:, U:2 * U] + mi[:, U:2 * U])
        rec_h = jnp.dot(r * h, p["recurrent_kernel"][:, 2 * U:], precision="highest")
        hh = jnp.tanh(mx[:, 2 * U:] + rec_h)
        h = z * h + (1.0 - z) * hh
    return jnp.dot(h, p["cls_w"], precision="highest") + p["cls_b"]


if __name__ == "__main__":
    # small TT-GRU config: input_dim = 4*8*8 = 256, units = 4*4*2 = 32
    tt_input_shape = [4, 8, 8]
    tt_output_shape = [4, 4, 2]
    tt_ranks = [1, 3, 3, 1]
    B, T = 2, 8

    key = jax.random.PRNGKey(0)
    kp, kx = jax.random.split(key)
    params = make_params(kp, tt_input_shape, tt_output_shape, tt_ranks)
    N = params["input_dim"]

    x = (jax.random.uniform(kx, (B, T, N), dtype=jnp.float32) - 0.5) * 0.1

    out = tt_gru_forward(x, params["w_eff"], params["bias"], params["recurrent_kernel"],
                         params["cls_w"], params["cls_b"], params["units"])
    out = jax.block_until_ready(out)

    ref = jax.block_until_ready(reference_forward(x, params))
    assert out.shape == (B, NUM_CLASSES)
    assert jnp.allclose(out, ref, atol=5e-2, rtol=5e-2), (out, ref)

    print("KERNEL_OK")
</pallas_src>

<mosaic_0001>
module attributes {stable_mosaic.version = 11 : i64} {
  func.func @tt_gru_kernel(%arg0: memref<64x256xbf16, #tpu.memory_space<vmem>>, %arg1: memref<256x384xbf16, #tpu.memory_space<vmem>>, %arg2: memref<1x384xf32, #tpu.memory_space<vmem>>, %arg3: memref<128x256xbf16, #tpu.memory_space<vmem>>, %arg4: memref<128x128xbf16, #tpu.memory_space<vmem>>, %arg5: memref<128x128xbf16, #tpu.memory_space<vmem>>, %arg6: memref<1x128xf32, #tpu.memory_space<vmem>>, %arg7: memref<8x128xf32, #tpu.memory_space<vmem>>, %arg8: memref<64x384xf32, #tpu.memory_space<vmem>>) attributes {dimension_semantics = [], scalar_prefetch = 0 : i64, scratch_operands = 1 : i64, tpu.core_type = #tpu.core_type<tc>} {
    %c0 = arith.constant 0 : index
    %c0_0 = arith.constant 0 : index
    %0 = vector.load %arg0[%c0, %c0_0] : memref<64x256xbf16, #tpu.memory_space<vmem>>, vector<64x256xbf16>
    %c0_1 = arith.constant 0 : index
    %c0_2 = arith.constant 0 : index
    %1 = vector.load %arg1[%c0_1, %c0_2] : memref<256x384xbf16, #tpu.memory_space<vmem>>, vector<256x384xbf16>
    %cst = arith.constant dense<0.000000e+00> : vector<64x384xf32>
    %2 = tpu.matmul %0, %1, %cst {dimension_numbers = #tpu.dot_dimension_numbers<[1], [0], [0], [1], [0, 0, 1, 1], [], []>} : vector<64x256xbf16>, vector<256x384xbf16>, vector<64x384xf32> -> vector<64x384xf32>
    %c0_3 = arith.constant 0 : index
    %c0_4 = arith.constant 0 : index
    %3 = vector.load %arg2[%c0_3, %c0_4] : memref<1x384xf32, #tpu.memory_space<vmem>>, vector<1x384xf32>
    %4 = vector.broadcast %3 : vector<1x384xf32> to vector<64x384xf32>
    %5 = arith.addf %2, %4 : vector<64x384xf32>
    %c0_5 = arith.constant 0 : index
    %c0_6 = arith.constant 0 : index
    %6 = vector.load %arg8[%c0_5, %c0_6] : memref<64x384xf32, #tpu.memory_space<vmem>>, vector<64x384xf32>
    tpu.vector_store %arg8[%c0_5, %c0_6], %5 {strides = array<i32>} : memref<64x384xf32, #tpu.memory_space<vmem>>, vector<64x384xf32>,
    %cst_7 = arith.constant 0.000000e+00 : f32
    %7 = vector.broadcast %cst_7 : f32 to vector<8x128xf32>
    %c0_i32 = arith.constant 0 : i32
    %c8_i32 = arith.constant 8 : i32
    %8 = arith.muli %c0_i32, %c8_i32 : i32
    %9 = tpu.assume_multiple %8, 8 : i32
    %10 = arith.index_cast %9 : i32 to index
    %c0_8 = arith.constant 0 : index
    %11 = vector.load %arg8[%10, %c0_8] : memref<64x384xf32, #tpu.memory_space<vmem>>, vector<8x384xf32>
    %12 = vector.extract_strided_slice %11 {offsets = [0, 0], sizes = [8, 128], strides = [1, 1]} : vector<8x384xf32> to vector<8x128xf32>
    %13 = vector.extract_strided_slice %11 {offsets = [0, 128], sizes = [8, 128], strides = [1, 1]} : vector<8x384xf32> to vector<8x128xf32>
    %14 = vector.extract_strided_slice %11 {offsets = [0, 256], sizes = [8, 128], strides = [1, 1]} : vector<8x384xf32> to vector<8x128xf32>
    %15 = arith.truncf %7 : vector<8x128xf32> to vector<8x128xbf16>
    %c0_9 = arith.constant 0 : index
    %c0_10 = arith.constant 0 : index
    %16 = vector.load %arg3[%c0_9, %c0_10] : memref<128x256xbf16, #tpu.memory_space<vmem>>, vector<128x256xbf16>
    %cst_11 = arith.constant dense<0.000000e+00> : vector<8x256xf32>
    %17 = tpu.matmul %15, %16, %cst_11 {dimension_numbers = #tpu.dot_dimension_numbers<[1], [0], [0], [1], [0, 0, 1, 1], [], []>} : vector<8x128xbf16>, vector<128x256xbf16>, vector<8x256xf32> -> vector<8x256xf32>
    %18 = vector.extract_strided_slice %17 {offsets = [0, 0], sizes = [8, 128], strides = [1, 1]} : vector<8x256xf32> to vector<8x128xf32>
    %19 = arith.addf %12, %18 : vector<8x128xf32>
    %cst_12 = arith.constant 0.166666672 : f32
    %20 = vector.broadcast %cst_12 : f32 to vector<8x128xf32>
    %21 = arith.mulf %19, %20 : vector<8x128xf32>
    %cst_13 = arith.constant 5.000000e-01 : f32
    %22 = vector.broadcast %cst_13 : f32 to vector<8x128xf32>
    %23 = arith.addf %21, %22 : vector<8x128xf32>
    %cst_14 = arith.constant 0.000000e+00 : f32
    %cst_15 = arith.constant 1.000000e+00 : f32
    %24 = vector.broadcast %cst_14 : f32 to vector<8x128xf32>
    %25 = arith.maximumf %24, %23 : vector<8x128xf32>
    %26 = vector.broadcast %cst_15 : f32 to vector<8x128xf32>
    %27 = arith.minimumf %26, %25 : vector<8x128xf32>
    %28 = vector.extract_strided_slice %17 {offsets = [0, 128], sizes = [8, 128], strides = [1, 1]} : vector<8x256xf32> to vector<8x128xf32>
    %29 = arith.addf %13, %28 : vector<8x128xf32>
    %cst_16 = arith.constant 0.166666672 : f32
    %30 = vector.broadcast %cst_16 : f32 to vector<8x128xf32>
    %31 = arith.mulf %29, %30 : vector<8x128xf32>
    %cst_17 = arith.constant 5.000000e-01 : f32
    %32 = vector.broadcast %cst_17 : f32 to vector<8x128xf32>
    %33 = arith.addf %31, %32 : vector<8x128xf32>
    %cst_18 = arith.constant 0.000000e+00 : f32
    %cst_19 = arith.constant 1.000000e+00 : f32
    %34 = vector.broadcast %cst_18 : f32 to vector<8x128xf32>
    %35 = arith.maximumf %34, %33 : vector<8x128xf32>
    %36 = vector.broadcast %cst_19 : f32 to vector<8x128xf32>
    %37 = arith.minimumf %36, %35 : vector<8x128xf32>
    %38 = arith.mulf %37, %7 : vector<8x128xf32>
    %39 = arith.truncf %38 : vector<8x128xf32> to vector<8x128xbf16>
    %c0_20 = arith.constant 0 : index
    %c0_21 = arith.constant 0 : index
    %40 = vector.load %arg4[%c0_20, %c0_21] : memref<128x128xbf16, #tpu.memory_space<vmem>>, vector<128x128xbf16>
    %cst_22 = arith.constant dense<0.000000e+00> : vector<8x128xf32>
    %41 = tpu.matmul %39, %40, %cst_22 {dimension_numbers = #tpu.dot_dimension_numbers<[1], [0], [0], [1], [0, 0, 1, 1], [], []>} : vector<8x128xbf16>, vector<128x128xbf16>, vector<8x128xf32> -> vector<8x128xf32>
    %42 = arith.addf %14, %41 : vector<8x128xf32>
    %43 = math.tanh %42 : vector<8x128xf32>
    %44 = arith.mulf %27, %7 : vector<8x128xf32>
    %cst_23 = arith.constant 1.000000e+00 : f32
    %45 = vector.broadcast %cst_23 : f32 to vector<8x128xf32>
    %46 = arith.subf %45, %27 : vector<8x128xf32>
    %47 = arith.mulf %46, %43 : vector<8x128xf32>
    %48 = arith.addf %44, %47 : vector<8x128xf32>
    %c1_i32 = arith.constant 1 : i32
    %c8_i32_24 = arith.constant 8 : i32
    %49 = arith.muli %c1_i32, %c8_i32_24 : i32
    %50 = tpu.assume_multiple %49, 8 : i32
    %51 = arith.index_cast %50 : i32 to index
    %c0_25 = arith.constant 0 : index
    %52 = vector.load %arg8[%51, %c0_25] : memref<64x384xf32, #tpu.memory_space<vmem>>, vector<8x384xf32>
    %53 = vector.extract_strided_slice %52 {offsets = [0, 0], sizes = [8, 128], strides = [1, 1]} : vector<8x384xf32> to vector<8x128xf32>
    %54 = vector.extract_strided_slice %52 {offsets = [0, 128], sizes = [8, 128], strides = [1, 1]} : vector<8x384xf32> to vector<8x128xf32>
    %55 = vector.extract_strided_slice %52 {offsets = [0, 256], sizes = [8, 128], strides = [1, 1]} : vector<8x384xf32> to vector<8x128xf32>
    %56 = arith.truncf %48 : vector<8x128xf32> to vector<8x128xbf16>
    %c0_26 = arith.constant 0 : index
    %c0_27 = arith.constant 0 : index
    %57 = vector.load %arg3[%c0_26, %c0_27] : memref<128x256xbf16, #tpu.memory_space<vmem>>, vector<128x256xbf16>
    %cst_28 = arith.constant dense<0.000000e+00> : vector<8x256xf32>
    %58 = tpu.matmul %56, %57, %cst_28 {dimension_numbers = #tpu.dot_dimension_numbers<[1], [0], [0], [1], [0, 0, 1, 1], [], []>} : vector<8x128xbf16>, vector<128x256xbf16>, vector<8x256xf32> -> vector<8x256xf32>
    %59 = vector.extract_strided_slice %58 {offsets = [0, 0], sizes = [8, 128], strides = [1, 1]} : vector<8x256xf32> to vector<8x128xf32>
    %60 = arith.addf %53, %59 : vector<8x128xf32>
    %cst_29 = arith.constant 0.166666672 : f32
    %61 = vector.broadcast %cst_29 : f32 to vector<8x128xf32>
    %62 = arith.mulf %60, %61 : vector<8x128xf32>
    %cst_30 = arith.constant 5.000000e-01 : f32
    %63 = vector.broadcast %cst_30 : f32 to vector<8x128xf32>
    %64 = arith.addf %62, %63 : vector<8x128xf32>
    %cst_31 = arith.constant 0.000000e+00 : f32
    %cst_32 = arith.constant 1.000000e+00 : f32
    %65 = vector.broadcast %cst_31 : f32 to vector<8x128xf32>
    %66 = arith.maximumf %65, %64 : vector<8x128xf32>
    %67 = vector.broadcast %cst_32 : f32 to vector<8x128xf32>
    %68 = arith.minimumf %67, %66 : vector<8x128xf32>
    %69 = vector.extract_strided_slice %58 {offsets = [0, 128], sizes = [8, 128], strides = [1, 1]} : vector<8x256xf32> to vector<8x128xf32>
    %70 = arith.addf %54, %69 : vector<8x128xf32>
    %cst_33 = arith.constant 0.166666672 : f32
    %71 = vector.broadcast %cst_33 : f32 to vector<8x128xf32>
    %72 = arith.mulf %70, %71 : vector<8x128xf32>
    %cst_34 = arith.constant 5.000000e-01 : f32
    %73 = vector.broadcast %cst_34 : f32 to vector<8x128xf32>
    %74 = arith.addf %72, %73 : vector<8x128xf32>
    %cst_35 = arith.constant 0.000000e+00 : f32
    %cst_36 = arith.constant 1.000000e+00 : f32
    %75 = vector.broadcast %cst_35 : f32 to vector<8x128xf32>
    %76 = arith.maximumf %75, %74 : vector<8x128xf32>
    %77 = vector.broadcast %cst_36 : f32 to vector<8x128xf32>
    %78 = arith.minimumf %77, %76 : vector<8x128xf32>
    %79 = arith.mulf %78, %48 : vector<8x128xf32>
    %80 = arith.truncf %79 : vector<8x128xf32> to vector<8x128xbf16>
    %c0_37 = arith.constant 0 : index
    %c0_38 = arith.constant 0 : index
    %81 = vector.load %arg4[%c0_37, %c0_38] : memref<128x128xbf16, #tpu.memory_space<vmem>>, vector<128x128xbf16>
    %cst_39 = arith.constant dense<0.000000e+00> : vector<8x128xf32>
    %82 = tpu.matmul %80, %81, %cst_39 {dimension_numbers = #tpu.dot_dimension_numbers<[1], [0], [0], [1], [0, 0, 1, 1], [], []>} : vector<8x128xbf16>, vector<128x128xbf16>, vector<8x128xf32> -> vector<8x128xf32>
    %83 = arith.addf %55, %82 : vector<8x128xf32>
    %84 = math.tanh %83 : vector<8x128xf32>
    %85 = arith.mulf %68, %48 : vector<8x128xf32>
    %cst_40 = arith.constant 1.000000e+00 : f32
    %86 = vector.broadcast %cst_40 : f32 to vector<8x128xf32>
    %87 = arith.subf %86, %68 : vector<8x128xf32>
    %88 = arith.mulf %87, %84 : vector<8x128xf32>
    %89 = arith.addf %85, %88 : vector<8x128xf32>
    %c2_i32 = arith.constant 2 : i32
    %c8_i32_41 = arith.constant 8 : i32
    %90 = arith.muli %c2_i32, %c8_i32_41 : i32
    %91 = tpu.assume_multiple %90, 8 : i32
    %92 = arith.index_cast %91 : i32 to index
    %c0_42 = arith.constant 0 : index
    %93 = vector.load %arg8[%92, %c0_42] : memref<64x384xf32, #tpu.memory_space<vmem>>, vector<8x384xf32>
    %94 = vector.extract_strided_slice %93 {offsets = [0, 0], sizes = [8, 128], strides = [1, 1]} : vector<8x384xf32> to vector<8x128xf32>
    %95 = vector.extract_strided_slice %93 {offsets = [0, 128], sizes = [8, 128], strides = [1, 1]} : vector<8x384xf32> to vector<8x128xf32>
    %96 = vector.extract_strided_slice %93 {offsets = [0, 256], sizes = [8, 128], strides = [1, 1]} : vector<8x384xf32> to vector<8x128xf32>
    %97 = arith.truncf %89 : vector<8x128xf32> to vector<8x128xbf16>
    %c0_43 = arith.constant 0 : index
    %c0_44 = arith.constant 0 : index
    %98 = vector.load %arg3[%c0_43, %c0_44] : memref<128x256xbf16, #tpu.memory_space<vmem>>, vector<128x256xbf16>
    %cst_45 = arith.constant dense<0.000000e+00> : vector<8x256xf32>
    %99 = tpu.matmul %97, %98, %cst_45 {dimension_numbers = #tpu.dot_dimension_numbers<[1], [0], [0], [1], [0, 0, 1, 1], [], []>} : vector<8x128xbf16>, vector<128x256xbf16>, vector<8x256xf32> -> vector<8x256xf32>
    %100 = vector.extract_strided_slice %99 {offsets = [0, 0], sizes = [8, 128], strides = [1, 1]} : vector<8x256xf32> to vector<8x128xf32>
    %101 = arith.addf %94, %100 : vector<8x128xf32>
    %cst_46 = arith.constant 0.166666672 : f32
    %102 = vector.broadcast %cst_46 : f32 to vector<8x128xf32>
    %103 = arith.mulf %101, %102 : vector<8x128xf32>
    %cst_47 = arith.constant 5.000000e-01 : f32
    %104 = vector.broadcast %cst_47 : f32 to vector<8x128xf32>
    %105 = arith.addf %103, %104 : vector<8x128xf32>
    %cst_48 = arith.constant 0.000000e+00 : f32
    %cst_49 = arith.constant 1.000000e+00 : f32
    %106 = vector.broadcast %cst_48 : f32 to vector<8x128xf32>
    %107 = arith.maximumf %106, %105 : vector<8x128xf32>
    %108 = vector.broadcast %cst_49 : f32 to vector<8x128xf32>
    %109 = arith.minimumf %108, %107 : vector<8x128xf32>
    %110 = vector.extract_strided_slice %99 {offsets = [0, 128], sizes = [8, 128], strides = [1, 1]} : vector<8x256xf32> to vector<8x128xf32>
    %111 = arith.addf %95, %110 : vector<8x128xf32>
    %cst_50 = arith.constant 0.166666672 : f32
    %112 = vector.broadcast %cst_50 : f32 to vector<8x128xf32>
    %113 = arith.mulf %111, %112 : vector<8x128xf32>
    %cst_51 = arith.constant 5.000000e-01 : f32
    %114 = vector.broadcast %cst_51 : f32 to vector<8x128xf32>
    %115 = arith.addf %113, %114 : vector<8x128xf32>
    %cst_52 = arith.constant 0.000000e+00 : f32
    %cst_53 = arith.constant 1.000000e+00 : f32
    %116 = vector.broadcast %cst_52 : f32 to vector<8x128xf32>
    %117 = arith.maximumf %116, %115 : vector<8x128xf32>
    %118 = vector.broadcast %cst_53 : f32 to vector<8x128xf32>
    %119 = arith.minimumf %118, %117 : vector<8x128xf32>
    %120 = arith.mulf %119, %89 : vector<8x128xf32>
    %121 = arith.truncf %120 : vector<8x128xf32> to vector<8x128xbf16>
    %c0_54 = arith.constant 0 : index
    %c0_55 = arith.constant 0 : index
    %122 = vector.load %arg4[%c0_54, %c0_55] : memref<128x128xbf16, #tpu.memory_space<vmem>>, vector<128x128xbf16>
    %cst_56 = arith.constant dense<0.000000e+00> : vector<8x128xf32>
    %123 = tpu.matmul %121, %122, %cst_56 {dimension_numbers = #tpu.dot_dimension_numbers<[1], [0], [0], [1], [0, 0, 1, 1], [], []>} : vector<8x128xbf16>, vector<128x128xbf16>, vector<8x128xf32> -> vector<8x128xf32>
    %124 = arith.addf %96, %123 : vector<8x128xf32>
    %125 = math.tanh %124 : vector<8x128xf32>
    %126 = arith.mulf %109, %89 : vector<8x128xf32>
    %cst_57 = arith.constant 1.000000e+00 : f32
    %127 = vector.broadcast %cst_57 : f32 to vector<8x128xf32>
    %128 = arith.subf %127, %109 : vector<8x128xf32>
    %129 = arith.mulf %128, %125 : vector<8x128xf32>
    %130 = arith.addf %126, %129 : vector<8x128xf32>
    %c3_i32 = arith.constant 3 : i32
    %c8_i32_58 = arith.constant 8 : i32
    %131 = arith.muli %c3_i32, %c8_i32_58 : i32
    %132 = tpu.assume_multiple %131, 8 : i32
    %133 = arith.index_cast %132 : i32 to index
    %c0_59 = arith.constant 0 : index
    %134 = vector.load %arg8[%133, %c0_59] : memref<64x384xf32, #tpu.memory_space<vmem>>, vector<8x384xf32>
    %135 = vector.extract_strided_slice %134 {offsets = [0, 0], sizes = [8, 128], strides = [1, 1]} : vector<8x384xf32> to vector<8x128xf32>
    %136 = vector.extract_strided_slice %134 {offsets = [0, 128], sizes = [8, 128], strides = [1, 1]} : vector<8x384xf32> to vector<8x128xf32>
    %137 = vector.extract_strided_slice %134 {offsets = [0, 256], sizes = [8, 128], strides = [1, 1]} : vector<8x384xf32> to vector<8x128xf32>
    %138 = arith.truncf %130 : vector<8x128xf32> to vector<8x128xbf16>
    %c0_60 = arith.constant 0 : index
    %c0_61 = arith.constant 0 : index
    %139 = vector.load %arg3[%c0_60, %c0_61] : memref<128x256xbf16, #tpu.memory_space<vmem>>, vector<128x256xbf16>
    %cst_62 = arith.constant dense<0.000000e+00> : vector<8x256xf32>
    %140 = tpu.matmul %138, %139, %cst_62 {dimension_numbers = #tpu.dot_dimension_numbers<[1], [0], [0], [1], [0, 0, 1, 1], [], []>} : vector<8x128xbf16>, vector<128x256xbf16>, vector<8x256xf32> -> vector<8x256xf32>
    %141 = vector.extract_strided_slice %140 {offsets = [0, 0], sizes = [8, 128], strides = [1, 1]} : vector<8x256xf32> to vector<8x128xf32>
    %142 = arith.addf %135, %141 : vector<8x128xf32>
    %cst_63 = arith.constant 0.166666672 : f32
    %143 = vector.broadcast %cst_63 : f32 to vector<8x128xf32>
    %144 = arith.mulf %142, %143 : vector<8x128xf32>
    %cst_64 = arith.constant 5.000000e-01 : f32
    %145 = vector.broadcast %cst_64 : f32 to vector<8x128xf32>
    %146 = arith.addf %144, %145 : vector<8x128xf32>
    %cst_65 = arith.constant 0.000000e+00 : f32
    %cst_66 = arith.constant 1.000000e+00 : f32
    %147 = vector.broadcast %cst_65 : f32 to vector<8x128xf32>
    %148 = arith.maximumf %147, %146 : vector<8x128xf32>
    %149 = vector.broadcast %cst_66 : f32 to vector<8x128xf32>
    %150 = arith.minimumf %149, %148 : vector<8x128xf32>
    %151 = vector.extract_strided_slice %140 {offsets = [0, 128], sizes = [8, 128], strides = [1, 1]} : vector<8x256xf32> to vector<8x128xf32>
    %152 = arith.addf %136, %151 : vector<8x128xf32>
    %cst_67 = arith.constant 0.166666672 : f32
    %153 = vector.broadcast %cst_67 : f32 to vector<8x128xf32>
    %154 = arith.mulf %152, %153 : vector<8x128xf32>
    %cst_68 = arith.constant 5.000000e-01 : f32
    %155 = vector.broadcast %cst_68 : f32 to vector<8x128xf32>
    %156 = arith.addf %154, %155 : vector<8x128xf32>
    %cst_69 = arith.constant 0.000000e+00 : f32
    %cst_70 = arith.constant 1.000000e+00 : f32
    %157 = vector.broadcast %cst_69 : f32 to vector<8x128xf32>
    %158 = arith.maximumf %157, %156 : vector<8x128xf32>
    %159 = vector.broadcast %cst_70 : f32 to vector<8x128xf32>
    %160 = arith.minimumf %159, %158 : vector<8x128xf32>
    %161 = arith.mulf %160, %130 : vector<8x128xf32>
    %162 = arith.truncf %161 : vector<8x128xf32> to vector<8x128xbf16>
    %c0_71 = arith.constant 0 : index
    %c0_72 = arith.constant 0 : index
    %163 = vector.load %arg4[%c0_71, %c0_72] : memref<128x128xbf16, #tpu.memory_space<vmem>>, vector<128x128xbf16>
    %cst_73 = arith.constant dense<0.000000e+00> : vector<8x128xf32>
    %164 = tpu.matmul %162, %163, %cst_73 {dimension_numbers = #tpu.dot_dimension_numbers<[1], [0], [0], [1], [0, 0, 1, 1], [], []>} : vector<8x128xbf16>, vector<128x128xbf16>, vector<8x128xf32> -> vector<8x128xf32>
    %165 = arith.addf %137, %164 : vector<8x128xf32>
    %166 = math.tanh %165 : vector<8x128xf32>
    %167 = arith.mulf %150, %130 : vector<8x128xf32>
    %cst_74 = arith.constant 1.000000e+00 : f32
    %168 = vector.broadcast %cst_74 : f32 to vector<8x128xf32>
    %169 = arith.subf %168, %150 : vector<8x128xf32>
    %170 = arith.mulf %169, %166 : vector<8x128xf32>
    %171 = arith.addf %167, %170 : vector<8x128xf32>
    %c4_i32 = arith.constant 4 : i32
    %c8_i32_75 = arith.constant 8 : i32
    %172 = arith.muli %c4_i32, %c8_i32_75 : i32
    %173 = tpu.assume_multiple %172, 8 : i32
    %174 = arith.index_cast %173 : i32 to index
    %c0_76 = arith.constant 0 : index
    %175 = vector.load %arg8[%174, %c0_76] : memref<64x384xf32, #tpu.memory_space<vmem>>, vector<8x384xf32>
    %176 = vector.extract_strided_slice %175 {offsets = [0, 0], sizes = [8, 128], strides = [1, 1]} : vector<8x384xf32> to vector<8x128xf32>
    %177 = vector.extract_strided_slice %175 {offsets = [0, 128], sizes = [8, 128], strides = [1, 1]} : vector<8x384xf32> to vector<8x128xf32>
    %178 = vector.extract_strided_slice %175 {offsets = [0, 256], sizes = [8, 128], strides = [1, 1]} : vector<8x384xf32> to vector<8x128xf32>
    %179 = arith.truncf %171 : vector<8x128xf32> to vector<8x128xbf16>
    %c0_77 = arith.constant 0 : index
    %c0_78 = arith.constant 0 : index
    %180 = vector.load %arg3[%c0_77, %c0_78] : memref<128x256xbf16, #tpu.memory_space<vmem>>, vector<128x256xbf16>
    %cst_79 = arith.constant dense<0.000000e+00> : vector<8x256xf32>
    %181 = tpu.matmul %179, %180, %cst_79 {dimension_numbers = #tpu.dot_dimension_numbers<[1], [0], [0], [1], [0, 0, 1, 1], [], []>} : vector<8x128xbf16>, vector<128x256xbf16>, vector<8x256xf32> -> vector<8x256xf32>
    %182 = vector.extract_strided_slice %181 {offsets = [0, 0], sizes = [8, 128], strides = [1, 1]} : vector<8x256xf32> to vector<8x128xf32>
    %183 = arith.addf %176, %182 : vector<8x128xf32>
    %cst_80 = arith.constant 0.166666672 : f32
    %184 = vector.broadcast %cst_80 : f32 to vector<8x128xf32>
    %185 = arith.mulf %183, %184 : vector<8x128xf32>
    %cst_81 = arith.constant 5.000000e-01 : f32
    %186 = vector.broadcast %cst_81 : f32 to vector<8x128xf32>
    %187 = arith.addf %185, %186 : vector<8x128xf32>
    %cst_82 = arith.constant 0.000000e+00 : f32
    %cst_83 = arith.constant 1.000000e+00 : f32
    %188 = vector.broadcast %cst_82 : f32 to vector<8x128xf32>
    %189 = arith.maximumf %188, %187 : vector<8x128xf32>
    %190 = vector.broadcast %cst_83 : f32 to vector<8x128xf32>
    %191 = arith.minimumf %190, %189 : vector<8x128xf32>
    %192 = vector.extract_strided_slice %181 {offsets = [0, 128], sizes = [8, 128], strides = [1, 1]} : vector<8x256xf32> to vector<8x128xf32>
    %193 = arith.addf %177, %192 : vector<8x128xf32>
    %cst_84 = arith.constant 0.166666672 : f32
    %194 = vector.broadcast %cst_84 : f32 to vector<8x128xf32>
    %195 = arith.mulf %193, %194 : vector<8x128xf32>
    %cst_85 = arith.constant 5.000000e-01 : f32
    %196 = vector.broadcast %cst_85 : f32 to vector<8x128xf32>
    %197 = arith.addf %195, %196 : vector<8x128xf32>
    %cst_86 = arith.constant 0.000000e+00 : f32
    %cst_87 = arith.constant 1.000000e+00 : f32
    %198 = vector.broadcast %cst_86 : f32 to vector<8x128xf32>
    %199 = arith.maximumf %198, %197 : vector<8x128xf32>
    %200 = vector.broadcast %cst_87 : f32 to vector<8x128xf32>
    %201 = arith.minimumf %200, %199 : vector<8x128xf32>
    %202 = arith.mulf %201, %171 : vector<8x128xf32>
    %203 = arith.truncf %202 : vector<8x128xf32> to vector<8x128xbf16>
    %c0_88 = arith.constant 0 : index
    %c0_89 = arith.constant 0 : index
    %204 = vector.load %arg4[%c0_88, %c0_89] : memref<128x128xbf16, #tpu.memory_space<vmem>>, vector<128x128xbf16>
    %cst_90 = arith.constant dense<0.000000e+00> : vector<8x128xf32>
    %205 = tpu.matmul %203, %204, %cst_90 {dimension_numbers = #tpu.dot_dimension_numbers<[1], [0], [0], [1], [0, 0, 1, 1], [], []>} : vector<8x128xbf16>, vector<128x128xbf16>, vector<8x128xf32> -> vector<8x128xf32>
    %206 = arith.addf %178, %205 : vector<8x128xf32>
    %207 = math.tanh %206 : vector<8x128xf32>
    %208 = arith.mulf %191, %171 : vector<8x128xf32>
    %cst_91 = arith.constant 1.000000e+00 : f32
    %209 = vector.broadcast %cst_91 : f32 to vector<8x128xf32>
    %210 = arith.subf %209, %191 : vector<8x128xf32>
    %211 = arith.mulf %210, %207 : vector<8x128xf32>
    %212 = arith.addf %208, %211 : vector<8x128xf32>
    %c5_i32 = arith.constant 5 : i32
    %c8_i32_92 = arith.constant 8 : i32
    %213 = arith.muli %c5_i32, %c8_i32_92 : i32
    %214 = tpu.assume_multiple %213, 8 : i32
    %215 = arith.index_cast %214 : i32 to index
    %c0_93 = arith.constant 0 : index
    %216 = vector.load %arg8[%215, %c0_93] : memref<64x384xf32, #tpu.memory_space<vmem>>, vector<8x384xf32>
    %217 = vector.extract_strided_slice %216 {offsets = [0, 0], sizes = [8, 128], strides = [1, 1]} : vector<8x384xf32> to vector<8x128xf32>
    %218 = vector.extract_strided_slice %216 {offsets = [0, 128], sizes = [8, 128], strides = [1, 1]} : vector<8x384xf32> to vector<8x128xf32>
    %219 = vector.extract_strided_slice %216 {offsets = [0, 256], sizes = [8, 128], strides = [1, 1]} : vector<8x384xf32> to vector<8x128xf32>
    %220 = arith.truncf %212 : vector<8x128xf32> to vector<8x128xbf16>
    %c0_94 = arith.constant 0 : index
    %c0_95 = arith.constant 0 : index
    %221 = vector.load %arg3[%c0_94, %c0_95] : memref<128x256xbf16, #tpu.memory_space<vmem>>, vector<128x256xbf16>
    %cst_96 = arith.constant dense<0.000000e+00> : vector<8x256xf32>
    %222 = tpu.matmul %220, %221, %cst_96 {dimension_numbers = #tpu.dot_dimension_numbers<[1], [0], [0], [1], [0, 0, 1, 1], [], []>} : vector<8x128xbf16>, vector<128x256xbf16>, vector<8x256xf32> -> vector<8x256xf32>
    %223 = vector.extract_strided_slice %222 {offsets = [0, 0], sizes = [8, 128], strides = [1, 1]} : vector<8x256xf32> to vector<8x128xf32>
    %224 = arith.addf %217, %223 : vector<8x128xf32>
    %cst_97 = arith.constant 0.166666672 : f32
    %225 = vector.broadcast %cst_97 : f32 to vector<8x128xf32>
    %226 = arith.mulf %224, %225 : vector<8x128xf32>
    %cst_98 = arith.constant 5.000000e-01 : f32
    %227 = vector.broadcast %cst_98 : f32 to vector<8x128xf32>
    %228 = arith.addf %226, %227 : vector<8x128xf32>
    %cst_99 = arith.constant 0.000000e+00 : f32
    %cst_100 = arith.constant 1.000000e+00 : f32
    %229 = vector.broadcast %cst_99 : f32 to vector<8x128xf32>
    %230 = arith.maximumf %229, %228 : vector<8x128xf32>
    %231 = vector.broadcast %cst_100 : f32 to vector<8x128xf32>
    %232 = arith.minimumf %231, %230 : vector<8x128xf32>
    %233 = vector.extract_strided_slice %222 {offsets = [0, 128], sizes = [8, 128], strides = [1, 1]} : vector<8x256xf32> to vector<8x128xf32>
    %234 = arith.addf %218, %233 : vector<8x128xf32>
    %cst_101 = arith.constant 0.166666672 : f32
    %235 = vector.broadcast %cst_101 : f32 to vector<8x128xf32>
    %236 = arith.mulf %234, %235 : vector<8x128xf32>
    %cst_102 = arith.constant 5.000000e-01 : f32
    %237 = vector.broadcast %cst_102 : f32 to vector<8x128xf32>
    %238 = arith.addf %236, %237 : vector<8x128xf32>
    %cst_103 = arith.constant 0.000000e+00 : f32
    %cst_104 = arith.constant 1.000000e+00 : f32
    %239 = vector.broadcast %cst_103 : f32 to vector<8x128xf32>
    %240 = arith.maximumf %239, %238 : vector<8x128xf32>
    %241 = vector.broadcast %cst_104 : f32 to vector<8x128xf32>
    %242 = arith.minimumf %241, %240 : vector<8x128xf32>
    %243 = arith.mulf %242, %212 : vector<8x128xf32>
    %244 = arith.truncf %243 : vector<8x128xf32> to vector<8x128xbf16>
    %c0_105 = arith.constant 0 : index
    %c0_106 = arith.constant 0 : index
    %245 = vector.load %arg4[%c0_105, %c0_106] : memref<128x128xbf16, #tpu.memory_space<vmem>>, vector<128x128xbf16>
    %cst_107 = arith.constant dense<0.000000e+00> : vector<8x128xf32>
    %246 = tpu.matmul %244, %245, %cst_107 {dimension_numbers = #tpu.dot_dimension_numbers<[1], [0], [0], [1], [0, 0, 1, 1], [], []>} : vector<8x128xbf16>, vector<128x128xbf16>, vector<8x128xf32> -> vector<8x128xf32>
    %247 = arith.addf %219, %246 : vector<8x128xf32>
    %248 = math.tanh %247 : vector<8x128xf32>
    %249 = arith.mulf %232, %212 : vector<8x128xf32>
    %cst_108 = arith.constant 1.000000e+00 : f32
    %250 = vector.broadcast %cst_108 : f32 to vector<8x128xf32>
    %251 = arith.subf %250, %232 : vector<8x128xf32>
    %252 = arith.mulf %251, %248 : vector<8x128xf32>
    %253 = arith.addf %249, %252 : vector<8x128xf32>
    %c6_i32 = arith.constant 6 : i32
    %c8_i32_109 = arith.constant 8 : i32
    %254 = arith.muli %c6_i32, %c8_i32_109 : i32
    %255 = tpu.assume_multiple %254, 8 : i32
    %256 = arith.index_cast %255 : i32 to index
    %c0_110 = arith.constant 0 : index
    %257 = vector.load %arg8[%256, %c0_110] : memref<64x384xf32, #tpu.memory_space<vmem>>, vector<8x384xf32>
    %258 = vector.extract_strided_slice %257 {offsets = [0, 0], sizes = [8, 128], strides = [1, 1]} : vector<8x384xf32> to vector<8x128xf32>
    %259 = vector.extract_strided_slice %257 {offsets = [0, 128], sizes = [8, 128], strides = [1, 1]} : vector<8x384xf32> to vector<8x128xf32>
    %260 = vector.extract_strided_slice %257 {offsets = [0, 256], sizes = [8, 128], strides = [1, 1]} : vector<8x384xf32> to vector<8x128xf32>
    %261 = arith.truncf %253 : vector<8x128xf32> to vector<8x128xbf16>
    %c0_111 = arith.constant 0 : index
    %c0_112 = arith.constant 0 : index
    %262 = vector.load %arg3[%c0_111, %c0_112] : memref<128x256xbf16, #tpu.memory_space<vmem>>, vector<128x256xbf16>
    %cst_113 = arith.constant dense<0.000000e+00> : vector<8x256xf32>
    %263 = tpu.matmul %261, %262, %cst_113 {dimension_numbers = #tpu.dot_dimension_numbers<[1], [0], [0], [1], [0, 0, 1, 1], [], []>} : vector<8x128xbf16>, vector<128x256xbf16>, vector<8x256xf32> -> vector<8x256xf32>
    %264 = vector.extract_strided_slice %263 {offsets = [0, 0], sizes = [8, 128], strides = [1, 1]} : vector<8x256xf32> to vector<8x128xf32>
    %265 = arith.addf %258, %264 : vector<8x128xf32>
    %cst_114 = arith.constant 0.166666672 : f32
    %266 = vector.broadcast %cst_114 : f32 to vector<8x128xf32>
    %267 = arith.mulf %265, %266 : vector<8x128xf32>
    %cst_115 = arith.constant 5.000000e-01 : f32
    %268 = vector.broadcast %cst_115 : f32 to vector<8x128xf32>
    %269 = arith.addf %267, %268 : vector<8x128xf32>
    %cst_116 = arith.constant 0.000000e+00 : f32
    %cst_117 = arith.constant 1.000000e+00 : f32
    %270 = vector.broadcast %cst_116 : f32 to vector<8x128xf32>
    %271 = arith.maximumf %270, %269 : vector<8x128xf32>
    %272 = vector.broadcast %cst_117 : f32 to vector<8x128xf32>
    %273 = arith.minimumf %272, %271 : vector<8x128xf32>
    %274 = vector.extract_strided_slice %263 {offsets = [0, 128], sizes = [8, 128], strides = [1, 1]} : vector<8x256xf32> to vector<8x128xf32>
    %275 = arith.addf %259, %274 : vector<8x128xf32>
    %cst_118 = arith.constant 0.166666672 : f32
    %276 = vector.broadcast %cst_118 : f32 to vector<8x128xf32>
    %277 = arith.mulf %275, %276 : vector<8x128xf32>
    %cst_119 = arith.constant 5.000000e-01 : f32
    %278 = vector.broadcast %cst_119 : f32 to vector<8x128xf32>
    %279 = arith.addf %277, %278 : vector<8x128xf32>
    %cst_120 = arith.constant 0.000000e+00 : f32
    %cst_121 = arith.constant 1.000000e+00 : f32
    %280 = vector.broadcast %cst_120 : f32 to vector<8x128xf32>
    %281 = arith.maximumf %280, %279 : vector<8x128xf32>
    %282 = vector.broadcast %cst_121 : f32 to vector<8x128xf32>
    %283 = arith.minimumf %282, %281 : vector<8x128xf32>
    %284 = arith.mulf %283, %253 : vector<8x128xf32>
    %285 = arith.truncf %284 : vector<8x128xf32> to vector<8x128xbf16>
    %c0_122 = arith.constant 0 : index
    %c0_123 = arith.constant 0 : index
    %286 = vector.load %arg4[%c0_122, %c0_123] : memref<128x128xbf16, #tpu.memory_space<vmem>>, vector<128x128xbf16>
    %cst_124 = arith.constant dense<0.000000e+00> : vector<8x128xf32>
    %287 = tpu.matmul %285, %286, %cst_124 {dimension_numbers = #tpu.dot_dimension_numbers<[1], [0], [0], [1], [0, 0, 1, 1], [], []>} : vector<8x128xbf16>, vector<128x128xbf16>, vector<8x128xf32> -> vector<8x128xf32>
    %288 = arith.addf %260, %287 : vector<8x128xf32>
    %289 = math.tanh %288 : vector<8x128xf32>
    %290 = arith.mulf %273, %253 : vector<8x128xf32>
    %cst_125 = arith.constant 1.000000e+00 : f32
    %291 = vector.broadcast %cst_125 : f32 to vector<8x128xf32>
    %292 = arith.subf %291, %273 : vector<8x128xf32>
    %293 = arith.mulf %292, %289 : vector<8x128xf32>
    %294 = arith.addf %290, %293 : vector<8x128xf32>
    %c7_i32 = arith.constant 7 : i32
    %c8_i32_126 = arith.constant 8 : i32
    %295 = arith.muli %c7_i32, %c8_i32_126 : i32
    %296 = tpu.assume_multiple %295, 8 : i32
    %297 = arith.index_cast %296 : i32 to index
    %c0_127 = arith.constant 0 : index
    %298 = vector.load %arg8[%297, %c0_127] : memref<64x384xf32, #tpu.memory_space<vmem>>, vector<8x384xf32>
    %299 = vector.extract_strided_slice %298 {offsets = [0, 0], sizes = [8, 128], strides = [1, 1]} : vector<8x384xf32> to vector<8x128xf32>
    %300 = vector.extract_strided_slice %298 {offsets = [0, 128], sizes = [8, 128], strides = [1, 1]} : vector<8x384xf32> to vector<8x128xf32>
    %301 = vector.extract_strided_slice %298 {offsets = [0, 256], sizes = [8, 128], strides = [1, 1]} : vector<8x384xf32> to vector<8x128xf32>
    %302 = arith.truncf %294 : vector<8x128xf32> to vector<8x128xbf16>
    %c0_128 = arith.constant 0 : index
    %c0_129 = arith.constant 0 : index
    %303 = vector.load %arg3[%c0_128, %c0_129] : memref<128x256xbf16, #tpu.memory_space<vmem>>, vector<128x256xbf16>
    %cst_130 = arith.constant dense<0.000000e+00> : vector<8x256xf32>
    %304 = tpu.matmul %302, %303, %cst_130 {dimension_numbers = #tpu.dot_dimension_numbers<[1], [0], [0], [1], [0, 0, 1, 1], [], []>} : vector<8x128xbf16>, vector<128x256xbf16>, vector<8x256xf32> -> vector<8x256xf32>
    %305 = vector.extract_strided_slice %304 {offsets = [0, 0], sizes = [8, 128], strides = [1, 1]} : vector<8x256xf32> to vector<8x128xf32>
    %306 = arith.addf %299, %305 : vector<8x128xf32>
    %cst_131 = arith.constant 0.166666672 : f32
    %307 = vector.broadcast %cst_131 : f32 to vector<8x128xf32>
    %308 = arith.mulf %306, %307 : vector<8x128xf32>
    %cst_132 = arith.constant 5.000000e-01 : f32
    %309 = vector.broadcast %cst_132 : f32 to vector<8x128xf32>
    %310 = arith.addf %308, %309 : vector<8x128xf32>
    %cst_133 = arith.constant 0.000000e+00 : f32
    %cst_134 = arith.constant 1.000000e+00 : f32
    %311 = vector.broadcast %cst_133 : f32 to vector<8x128xf32>
    %312 = arith.maximumf %311, %310 : vector<8x128xf32>
    %313 = vector.broadcast %cst_134 : f32 to vector<8x128xf32>
    %314 = arith.minimumf %313, %312 : vector<8x128xf32>
    %315 = vector.extract_strided_slice %304 {offsets = [0, 128], sizes = [8, 128], strides = [1, 1]} : vector<8x256xf32> to vector<8x128xf32>
    %316 = arith.addf %300, %315 : vector<8x128xf32>
    %cst_135 = arith.constant 0.166666672 : f32
    %317 = vector.broadcast %cst_135 : f32 to vector<8x128xf32>
    %318 = arith.mulf %316, %317 : vector<8x128xf32>
    %cst_136 = arith.constant 5.000000e-01 : f32
    %319 = vector.broadcast %cst_136 : f32 to vector<8x128xf32>
    %320 = arith.addf %318, %319 : vector<8x128xf32>
    %cst_137 = arith.constant 0.000000e+00 : f32
    %cst_138 = arith.constant 1.000000e+00 : f32
    %321 = vector.broadcast %cst_137 : f32 to vector<8x128xf32>
    %322 = arith.maximumf %321, %320 : vector<8x128xf32>
    %323 = vector.broadcast %cst_138 : f32 to vector<8x128xf32>
    %324 = arith.minimumf %323, %322 : vector<8x128xf32>
    %325 = arith.mulf %324, %294 : vector<8x128xf32>
    %326 = arith.truncf %325 : vector<8x128xf32> to vector<8x128xbf16>
    %c0_139 = arith.constant 0 : index
    %c0_140 = arith.constant 0 : index
    %327 = vector.load %arg4[%c0_139, %c0_140] : memref<128x128xbf16, #tpu.memory_space<vmem>>, vector<128x128xbf16>
    %cst_141 = arith.constant dense<0.000000e+00> : vector<8x128xf32>
    %328 = tpu.matmul %326, %327, %cst_141 {dimension_numbers = #tpu.dot_dimension_numbers<[1], [0], [0], [1], [0, 0, 1, 1], [], []>} : vector<8x128xbf16>, vector<128x128xbf16>, vector<8x128xf32> -> vector<8x128xf32>
    %329 = arith.addf %301, %328 : vector<8x128xf32>
    %330 = math.tanh %329 : vector<8x128xf32>
    %331 = arith.mulf %314, %294 : vector<8x128xf32>
    %cst_142 = arith.constant 1.000000e+00 : f32
    %332 = vector.broadcast %cst_142 : f32 to vector<8x128xf32>
    %333 = arith.subf %332, %314 : vector<8x128xf32>
    %334 = arith.mulf %333, %330 : vector<8x128xf32>
    %335 = arith.addf %331, %334 : vector<8x128xf32>
    %c8_i32_143 = arith.constant 8 : i32
    %336 = arith.truncf %335 : vector<8x128xf32> to vector<8x128xbf16>
    %c0_144 = arith.constant 0 : index
    %c0_145 = arith.constant 0 : index
    %337 = vector.load %arg5[%c0_144, %c0_145] : memref<128x128xbf16, #tpu.memory_space<vmem>>, vector<128x128xbf16>
    %cst_146 = arith.constant dense<0.000000e+00> : vector<8x128xf32>
    %338 = tpu.matmul %336, %337, %cst_146 {dimension_numbers = #tpu.dot_dimension_numbers<[1], [0], [0], [1], [0, 0, 1, 1], [], []>} : vector<8x128xbf16>, vector<128x128xbf16>, vector<8x128xf32> -> vector<8x128xf32>
    %c0_147 = arith.constant 0 : index
    %c0_148 = arith.constant 0 : index
    %339 = vector.load %arg6[%c0_147, %c0_148] : memref<1x128xf32, #tpu.memory_space<vmem>>, vector<1x128xf32>
    %340 = vector.broadcast %339 : vector<1x128xf32> to vector<8x128xf32>
    %341 = arith.addf %338, %340 : vector<8x128xf32>
    %c0_149 = arith.constant 0 : index
    %c0_150 = arith.constant 0 : index
    %342 = vector.load %arg7[%c0_149, %c0_150] : memref<8x128xf32, #tpu.memory_space<vmem>>, vector<8x128xf32>
    tpu.vector_store %arg7[%c0_149, %c0_150], %341 {strides = array<i32>} : memref<8x128xf32, #tpu.memory_space<vmem>>, vector<8x128xf32>,
    return
  }
}

</mosaic_0001>

<bundles_post_ra>
// kernel: tpu_custom_call.1
= control target key start
LH: loop header
LB: loop body
LE: loop exit
PB: predicated region body
PF: predicated region fallthrough
CT: control target
= control target key end

     0   :  { %12 = vsyncpa [#allocation4], 0  ;;  %s3042_s0 = inlined_call_operand.hbm [shape: bf16[64,256], index: 0, kind: input, shape index: {}]   ;;  %s3043_s1 = inlined_call_operand.hbm [shape: bf16[256,384], index: 1, kind: input, shape index: {}]   ;;  %s3044_s2 = inlined_call_operand.vmem [shape: f32[1,384], index: 2, kind: input, shape index: {}]   ;;  %s3045_s3 = inlined_call_operand.hbm [shape: bf16[128,256], index: 3, kind: input, shape index: {}]   ;;  %s3046_s4 = inlined_call_operand.hbm [shape: bf16[128,128], index: 4, kind: input, shape index: {}]   ;;  %s3047_s5 = inlined_call_operand.hbm [shape: bf16[128,128], index: 5, kind: input, shape index: {}]   ;;  %s3048_s6 = inlined_call_operand.vmem [shape: f32[1,128], index: 6, kind: input, shape index: {}]   ;;  %s3049_s7 = inlined_call_operand.hbm [shape: f32[8,128], index: 7, kind: output, shape index: {}]  }
   0x1   :  { %13 = vsyncpa [#allocation7], 0 }
   0x2   :  { %14 = vsyncpa [#allocation10], 0 }
   0x3   :  { %15 = vsyncpa [#allocation5], 0  ;;  %s2468_s24 = smov [#allocation6]  }
   0x4   :  { %s33_s25 = sshll.u32 %s2468_s24, 4  ;;  %s34_s25 = int_to_ptr.vmem [resolvable:$true] %s33_s25 }
   0x5   :  { %s2348_s26 = scalar_lea.vmem %s34_s25, 6144  ;;  %p2353_p1 = scmp.lt.s32.totalorder %s34_s25, %s34_s25 }
   0x6   :  { %p2349_p0 = scmp.ne.s32.totalorder %s34_s25, %s2348_s26  ;;  %p2354_p2 = scmp.lt.s32.totalorder %s2348_s26, %s2348_s26 }
   0x8   :  { %p2355_p3 = por %p2354_p2, %p2353_p1 }
   0xa   :  { %p2356_p4 = pnand %p2355_p3, %p2349_p0 }
   0xc   :  { %2359 = shalt.err (!%p2356_p4)
}
   0xd   :  { %s2469_s27 = smov 192   ;;  %s2470_s28 = smov 12  }
   0xe   :  { %39 = dma.hbm_to_vmem [thread:$0]  %s3043_s1, 6144, %s34_s25, [#allocation7], %s2469_s27, %s2469_s27, %s2470_s28  }
   0xf   :  { %s2471_s8 = smov [#allocation9]  }
  0x10   :  { %s59_s9 = sshll.u32 %s2471_s8, 4  ;;  %s60_s9 = int_to_ptr.vmem [resolvable:$true] %s59_s9 }
  0x11   :  { %s2368_s10 = scalar_lea.vmem %s60_s9, 1024  ;;  %p2373_p6 = scmp.lt.s32.totalorder %s60_s9, %s60_s9 }
  0x12   :  { %p2369_p5 = scmp.ne.s32.totalorder %s60_s9, %s2368_s10  ;;  %p2374_p7 = scmp.lt.s32.totalorder %s2368_s10, %s2368_s10 }
  0x14   :  { %p2375_p8 = por %p2374_p7, %p2373_p6 }
  0x16   :  { %p2376_p9 = pnand %p2375_p8, %p2369_p5 }
  0x18   :  { %2379 = shalt.err (!%p2376_p9)
}
  0x19   :  { %s2472_s11 = smov 64   ;;  %s2473_s12 = smov 4  }
  0x1a   :  { %65 = dma.hbm_to_vmem [thread:$0]  %s3046_s4, 1024, %s60_s9, [#allocation10], %s2472_s11, %s2472_s11, %s2473_s12  }
  0x1b   :  { %s2474_s1 = smov [#allocation3]  }
  0x1c   :  { %s21_s15 = sshll.u32 %s2474_s1, 4  ;;  %s22_s15 = int_to_ptr.vmem [resolvable:$true] %s21_s15 }
  0x1d   :  { %s2388_s16 = scalar_lea.vmem %s22_s15, 1024  ;;  %p2393_p11 = scmp.lt.s32.totalorder %s22_s15, %s22_s15 }
  0x1e   :  { %p2389_p10 = scmp.ne.s32.totalorder %s22_s15, %s2388_s16  ;;  %p2394_p12 = scmp.lt.s32.totalorder %s2388_s16, %s2388_s16 }
  0x20   :  { %p2395_p13 = por %p2394_p12, %p2393_p11 }
  0x22   :  { %p2396_p0 = pnand %p2395_p13, %p2389_p10 }
  0x24   :  { %2399 = shalt.err (!%p2396_p0)
}
  0x25   :  { %s2475_s17 = smov 128   ;;  %s2476_s18 = smov 8  }
  0x26   :  { %27 = dma.hbm_to_vmem [thread:$0]  %s3042_s0, 1024, %s22_s15, [#allocation4], %s2475_s17, %s2475_s17, %s2476_s18  }
  0x27   :  { %s2477_s21 = smov [#allocation8]   ;;  %s2478_s4 = smov [#allocation11]  }
  0x28   :  { %s47_s22 = sshll.u32 %s2477_s21, 4  ;;  %s71_s23 = sshll.u32 %s2478_s4, 4  ;;  %s48_s22 = int_to_ptr.vmem [resolvable:$true] %s47_s22  ;;  %s72_s23 = int_to_ptr.vmem [resolvable:$true] %s71_s23 }
  0x29   :  { %s2408_s24 = scalar_lea.vmem %s48_s22, 2048  ;;  %p2413_p2 = scmp.lt.s32.totalorder %s48_s22, %s48_s22 }
  0x2a   :  { %p2409_p1 = scmp.ne.s32.totalorder %s48_s22, %s2408_s24  ;;  %p2414_p3 = scmp.lt.s32.totalorder %s2408_s24, %s2408_s24 }
  0x2c   :  { %p2415_p4 = por %p2414_p3, %p2413_p2 }
  0x2e   :  { %p2416_p5 = pnand %p2415_p4, %p2409_p1 }
  0x30   :  { %2419 = shalt.err (!%p2416_p5)
}
  0x31   :  { %53 = dma.hbm_to_vmem [thread:$0]  %s3045_s3, 2048, %s48_s22, [#allocation7], %s2475_s17, %s2475_s17, %s2476_s18  }
  0x32   :  { %s2428_s27 = scalar_lea.vmem %s72_s23, 1024  ;;  %p2433_p7 = scmp.lt.s32.totalorder %s72_s23, %s72_s23 }
  0x33   :  { %p2429_p6 = scmp.ne.s32.totalorder %s72_s23, %s2428_s27  ;;  %p2434_p8 = scmp.lt.s32.totalorder %s2428_s27, %s2428_s27 }
  0x35   :  { %p2435_p9 = por %p2434_p8, %p2433_p7 }
  0x37   :  { %p2436_p10 = pnand %p2435_p9, %p2429_p6 }
  0x39   :  { %2439 = shalt.err (!%p2436_p10)
}
  0x3a   :  { %77 = dma.hbm_to_vmem [thread:$0]  %s3047_s5, 1024, %s72_s23, [#allocation10], %s2472_s11, %s2472_s11, %s2473_s12  }
  0x3b   :  { %2460 = dma.done.wait [#allocation4], 1024  }
  0x3c   :  { %2461 = vsyncadd [#allocation4], 4294966272 }
  0x3d   :  { %2462 = dma.done.wait [#allocation7], 8192  }
  0x3e   :  { %2463 = vsyncadd [#allocation7], 4294959104 }
  0x3f   :  { %2464 = dma.done.wait [#allocation10], 2048  }
  0x40   :  { %2465 = vsyncadd [#allocation10], 4294965248  ;;  %v2192_v0 = vld [vmem:[#allocation6 + $0xac] ss:$12 sps:$4 sm:$0xff]   ;;  %v2194_v1 = vld [vmem:[#allocation6 + $0x170] ss:$12 sps:$4 sm:$0xff]  }
  0x41   :  { %481 = vmatprep.subr.bf16.mxu0 %v2192_v0  ;;  %v2195_v2 = vld [vmem:[#allocation6 + $0xa8] ss:$12 sps:$4 sm:$0xff]   ;;  %1876 = vmatprep.subr.bf16.mxu1 %v2194_v1  ;;  %v2196_v3 = vld [vmem:[#allocation6 + $0xb0] ss:$12 sps:$4 sm:$0xff]   ;;  %v2199_v5 = vld [vmem:[#allocation6 + $0x158] ss:$12 sps:$4 sm:$0xff]  }
  0x42   :  { %482 = vmatpush1.bf16.msra.mxu0 %v2195_v2  ;;  %v2197_v4 = vld [vmem:[#allocation6 + $0x94] ss:$12 sps:$4 sm:$0xff]   ;;  %1877 = vmatpush3.bf16.msra.mxu1 %v2196_v3  ;;  %v2200_v6 = vld [vmem:[#allocation6 + $0x90] ss:$12 sps:$4 sm:$0xff]   ;;  %v2201_v7 = vld [vmem:[#allocation6 + $0x98] ss:$12 sps:$4 sm:$0xff]  }
  0x43   :  { %483 = vmatprep.subr.bf16.mxu0 %v2197_v4  ;;  %1878 = vmatprep.subr.bf16.mxu1 %v2199_v5  ;;  %v2202_v8 = vld [vmem:[#allocation6 + $0x7c] ss:$12 sps:$4 sm:$0xff]   ;;  %v2204_v9 = vld [vmem:[#allocation6 + $0x140] ss:$12 sps:$4 sm:$0xff]   ;;  %v2205_v10 = vld [vmem:[#allocation6 + $0x78] ss:$12 sps:$4 sm:$0xff]  }
  0x44   :  { %v2206_v11 = vld [vmem:[#allocation6 + $0x80] ss:$12 sps:$4 sm:$0xff]   ;;  %v2207_v12 = vld [vmem:[#allocation6 + $0x64] ss:$12 sps:$4 sm:$0xff]   ;;  %v2209_v13 = vld [vmem:[#allocation6 + $0x128] ss:$12 sps:$4 sm:$0xff]  }
  0x45   :  { %v2210_v14 = vld [vmem:[#allocation6 + $0x60] ss:$12 sps:$4 sm:$0xff]   ;;  %v2211_v15 = vld [vmem:[#allocation6 + $0x68] ss:$12 sps:$4 sm:$0xff]   ;;  %v2214_v17 = vld [vmem:[#allocation6 + $0x110] ss:$12 sps:$4 sm:$0xff]  }
  0x46   :  { %484 = vmatpush1.bf16.msra.mxu0 %v2200_v6  ;;  %1879 = vmatpush3.bf16.msra.mxu1 %v2201_v7  ;;  %v2212_v16 = vld [vmem:[#allocation6 + $0x4c] ss:$12 sps:$4 sm:$0xff]   ;;  %v2215_v18 = vld [vmem:[#allocation6 + $0x48] ss:$12 sps:$4 sm:$0xff]   ;;  %v2216_v19 = vld [vmem:[#allocation6 + $0x50] ss:$12 sps:$4 sm:$0xff]  }
  0x47   :  { %485 = vmatprep.subr.bf16.mxu0 %v2202_v8  ;;  %1880 = vmatprep.subr.bf16.mxu1 %v2204_v9  ;;  %v2217_v20 = vld [vmem:[#allocation6 + $0x34] ss:$12 sps:$4 sm:$0xff]   ;;  %v2219_v21 = vld [vmem:[#allocation6 + $0xf8] ss:$12 sps:$4 sm:$0xff]   ;;  %v2220_v22 = vld [vmem:[#allocation6 + $0x30] ss:$12 sps:$4 sm:$0xff]   ;;  %v170_v9 = vlaneseq }
  0x48   :  { %v2221_v23 = vld [vmem:[#allocation6 + $0x38] ss:$12 sps:$4 sm:$0xff]   ;;  %v2222_v24 = vld [vmem:[#allocation6 + $0x1c] ss:$12 sps:$4 sm:$0xff]   ;;  %v2224_v25 = vld [vmem:[#allocation6 + $0xe0] ss:$12 sps:$4 sm:$0xff]  }
  0x49   :  { %v2225_v26 = vld [vmem:[#allocation6 + $0x18] ss:$12 sps:$4 sm:$0xff]   ;;  %v2226_v27 = vld [vmem:[#allocation6 + $0x20] ss:$12 sps:$4 sm:$0xff]   ;;  %v2229_v29 = vld [vmem:[#allocation6 + $0xc8] ss:$12 sps:$4 sm:$0xff]  }
  0x4a   :  { %486 = vmatpush1.bf16.msra.mxu0 %v2205_v10  ;;  %1881 = vmatpush3.bf16.msra.mxu1 %v2206_v11  ;;  %v2227_v28 = vld [vmem:[#allocation6 + $0x4] ss:$12 sps:$4 sm:$0xff]   ;;  %v2230_v30 = vld [vmem:[#allocation6] ss:$12 sps:$4 sm:$0xff]   ;;  %v2231_v32 = vld [vmem:[#allocation6 + $0x8] ss:$12 sps:$4 sm:$0xff]  }
  0x4b   :  { %487 = vmatprep.subr.bf16.mxu0 %v2207_v12  ;;  %1882 = vmatprep.subr.bf16.mxu1 %v2209_v13  ;;  %v2234_v31 = vld [vmem:[#allocation3 + $0x4] ss:$8 sps:$4 sm:$0xff]   ;;  %v2544_v34 = vld [vmem:[#allocation3] ss:$8 sps:$4 sm:$0xff]   ;;  %v2546_v35 = vld [vmem:[#allocation8 + $0x74] ss:$8 sps:$4 sm:$0xff]  }
  0x4c   :  { %v2235_v33 = vld [vmem:[#allocation6 + $0x16c] ss:$12 sps:$4 sm:$0xff]   ;;  %586 = vmatprep.mubr.bf16.mxu1 %v2234_v31  ;;  %v2239_v36 = vld [vmem:[#allocation6 + $0x168] ss:$12 sps:$4 sm:$0xff]   ;;  %513 = vmatprep.mubr.bf16.mxu0 %v2234_v31  ;;  %v2245_v41 = vld [vmem:[#allocation6 + $0x150] ss:$12 sps:$4 sm:$0xff]  }
  0x4d   :  { %v2548_v37 = vld [vmem:[#allocation8 + $0x70] ss:$8 sps:$4 sm:$0xff]   ;;  %v2241_v38 = vld [vmem:[#allocation6 + $0x154] ss:$12 sps:$4 sm:$0xff]   ;;  %v2550_v39 = vld [vmem:[#allocation8 + $0x64] ss:$8 sps:$4 sm:$0xff]  }
  0x4e   :  { %488 = vmatpush1.bf16.msra.mxu0 %v2210_v14  ;;  %1883 = vmatpush3.bf16.msra.mxu1 %v2211_v15  ;;  %v2553_v40 = vld [vmem:[#allocation3 + $0x14] ss:$8 sps:$4 sm:$0xff]   ;;  %v2556_v42 = vld [vmem:[#allocation8 + $0x60] ss:$8 sps:$4 sm:$0xff]   ;;  %v2563_v45 = vld [vmem:[#allocation3 + $0x10] ss:$8 sps:$4 sm:$0xff]  }
  0x4f   :  { %489 = vmatprep.subr.bf16.mxu0 %v2212_v16  ;;  %1884 = vmatprep.subr.bf16.mxu1 %v2214_v17  ;;  %v2249_v43 = vld [vmem:[#allocation6 + $0x13c] ss:$12 sps:$4 sm:$0xff]   ;;  %v2254_v46 = vld [vmem:[#allocation6 + $0x138] ss:$12 sps:$4 sm:$0xff]   ;;  %v2260_v51 = vld [vmem:[#allocation6 + $0x120] ss:$12 sps:$4 sm:$0xff]  }
  0x50   :  { %v2561_v44 = vld [vmem:[#allocation8 + $0x54] ss:$8 sps:$4 sm:$0xff]   ;;  %v2565_v47 = vld [vmem:[#allocation8 + $0x50] ss:$8 sps:$4 sm:$0xff]   ;;  %v2568_v49 = vld [vmem:[#allocation8 + $0x44] ss:$8 sps:$4 sm:$0xff]  }
  0x51   :  { %v2256_v48 = vld [vmem:[#allocation6 + $0x124] ss:$12 sps:$4 sm:$0xff]   ;;  %v2572_v52 = vld [vmem:[#allocation8 + $0x40] ss:$8 sps:$4 sm:$0xff]   ;;  %v2264_v53 = vld [vmem:[#allocation6 + $0x10c] ss:$12 sps:$4 sm:$0xff]  }
  0x52   :  { %490 = vmatpush1.bf16.msra.mxu0 %v2215_v18  ;;  %1885 = vmatpush3.bf16.msra.mxu1 %v2216_v19  ;;  %v2262_v50 = vld [vmem:[#allocation3 + $0x24] ss:$8 sps:$4 sm:$0xff]   ;;  %v2576_v54 = vld [vmem:[#allocation8 + $0x34] ss:$8 sps:$4 sm:$0xff]   ;;  %v2266_v55 = vld [vmem:[#allocation3 + $0x20] ss:$8 sps:$4 sm:$0xff]  }
  0x53   :  { %491 = vmatprep.subr.bf16.mxu0 %v2217_v20  ;;  %1886 = vmatprep.subr.bf16.mxu1 %v2219_v21  ;;  %v2269_v56 = vld [vmem:[#allocation6 + $0x108] ss:$12 sps:$4 sm:$0xff]   ;;  %v2578_v57 = vld [vmem:[#allocation8 + $0x30] ss:$8 sps:$4 sm:$0xff]   ;;  %v2582_v59 = vld [vmem:[#allocation8 + $0x24] ss:$8 sps:$4 sm:$0xff]  }
  0x54   :  { %v2271_v58 = vld [vmem:[#allocation6 + $0xf4] ss:$12 sps:$4 sm:$0xff]   ;;  %v2275_v61 = vld [vmem:[#allocation6 + $0xf0] ss:$12 sps:$4 sm:$0xff]   ;;  %v2284_v2 = vld [vmem:[#allocation6 + $0xd8] ss:$12 sps:$4 sm:$0xff]  }
  0x55   :  { %v2277_v60 = vld [vmem:[#allocation3 + $0x34] ss:$8 sps:$4 sm:$0xff]   ;;  %v2584_v62 = vld [vmem:[#allocation8 + $0x20] ss:$8 sps:$4 sm:$0xff]   ;;  %v2281_v1 = vld [vmem:[#allocation3 + $0x30] ss:$8 sps:$4 sm:$0xff]  }
  0x56   :  { %492 = vmatpush1.bf16.msra.mxu0 %v2220_v22  ;;  %1887 = vmatpush3.bf16.msra.mxu1 %v2221_v23  ;;  %v2279_v63 = vld [vmem:[#allocation6 + $0xdc] ss:$12 sps:$4 sm:$0xff]   ;;  %v2590_v3 = vld [vmem:[#allocation8 + $0x10] ss:$8 sps:$4 sm:$0xff]   ;;  %v2592_v5 = vld [vmem:[#allocation8 + $0x4] ss:$8 sps:$4 sm:$0xff]  }
  0x57   :  { %493 = vmatprep.subr.bf16.mxu0 %v2222_v24  ;;  %1888 = vmatprep.subr.bf16.mxu1 %v2224_v25  ;;  %v2587_v0 = vld [vmem:[#allocation8 + $0x14] ss:$8 sps:$4 sm:$0xff]   ;;  %v2286_v4 = vld [vmem:[#allocation6 + $0xc4] ss:$12 sps:$4 sm:$0xff]   ;;  %v2290_v6 = vld [vmem:[#allocation6 + $0xc0] ss:$12 sps:$4 sm:$0xff]  }
  0x58   :  { %v2596_v7 = vld [vmem:[#allocation8] ss:$8 sps:$4 sm:$0xff]   ;;  %v3050_v8 = vmov 0   ;;  %v2624_v10 = vshrl.u32 %v170_v9, 7  ;;  %v2635_v14 = vld [vmem:[#allocation9 + $0x38] sm:$0xff]   ;;  %v2480_v15 = vmov 0.0  }
  0x59   :  { %v2630_v12 = vld [vmem:[%s3044_s2] sm:$0x7]  ;;  %v2640_v16 = vld [vmem:[#allocation9 + $0x30] sm:$0xff]   ;;  %v2644_v17 = vld [vmem:[#allocation9 + $0x28] sm:$0xff]   ;;  %vm2481_vm0 = vmmov 0   ;;  %s2482_s30 = smov [#allocation12]  }
  0x5a   :  { %494 = vmatpush1.bf16.msra.mxu0 %v2225_v26  ;;  %1889 = vmatpush3.bf16.msra.mxu1 %v2226_v27  ;;  %v180_v11 = vsub.s32 2, %v2624_v10  ;;  %v172_v18 = vsub.s32 0, %v2624_v10  ;;  %v2649_v19 = vld [vmem:[#allocation9 + $0x20] sm:$0xff]   ;;  %v2656_v21 = vld [vmem:[#allocation9 + $0x18] sm:$0xff]   ;;  %v2660_v22 = vld [vmem:[#allocation9 + $0x10] sm:$0xff]   ;;  %s1769_s8 = sshll.u32 %s2482_s30, 4  ;;  %s1770_s8 = int_to_ptr.vmem [resolvable:$true] %s1769_s8 }
  0x5b   :  { %495 = vmatprep.subr.bf16.mxu0 %v2227_v28  ;;  %1890 = vmatprep.subr.bf16.mxu1 %v2229_v29  ;;  %v2664_v23 = vld [vmem:[#allocation9 + $0x8] sm:$0xff]   ;;  %v2668_v24 = vld [vmem:[#allocation9] sm:$0xff]   ;;  %s2440_s9 = scalar_lea.vmem %s1770_s8, 128  ;;  %p2445_p12 = scmp.lt.s32.totalorder %s1770_s8, %s1770_s8 }
  0x5c   :  { %v2633_v13 = vrot.slane %v2630_v12, %v180_v11  ;;  %v2652_v20 = vrot.slane %v2630_v12, %v172_v18  ;;  %p2441_p11 = scmp.ne.s32.totalorder %s1770_s8, %s2440_s9  ;;  %p2446_p13 = scmp.lt.s32.totalorder %s2440_s9, %s2440_s9 }
  0x5e   :  { %496 = vmatpush1.bf16.msra.mxu0 %v2230_v30  ;;  %1891 = vmatpush3.bf16.msra.mxu1 %v2231_v32  ;;  %p2447_p0 = por %p2446_p13, %p2445_p12 }
  0x5f   :  { %497 = vmatprep.subr.bf16.mxu0 %v2235_v33  ;;  %745 = vmatprep.subr.bf16.mxu1 %v2546_v35 }
  0x60   :  { %p2448_p1 = pnand %p2447_p0, %p2441_p11 }
  0x61   :  { %587 = vmatmul.mubr.bf16.vlgmr.msra.gmra.mxu1 %v2544_v34 }
  0x62   :  { %498 = vmatpush2.bf16.msra.mxu0 %v2239_v36  ;;  %746 = vmatpush1.bf16.msra.mxu1 %v2548_v37 }
  0x63   :  { %499 = vmatprep.subr.bf16.mxu0 %v2241_v38  ;;  %747 = vmatprep.subr.bf16.mxu1 %v2550_v39 }
  0x64   :  { %594 = vmatprep.mubr.bf16.mxu1 %v2553_v40 }
  0x66   :  { %500 = vmatpush2.bf16.msra.mxu0 %v2245_v41  ;;  %748 = vmatpush1.bf16.msra.mxu1 %v2556_v42 }
  0x67   :  { %501 = vmatprep.subr.bf16.mxu0 %v2249_v43  ;;  %749 = vmatprep.subr.bf16.mxu1 %v2561_v44 }
  0x69   :  { %595 = vmatmul.mubr.bf16.gmra.mxu1 %v2563_v45 }
  0x6a   :  { %502 = vmatpush2.bf16.msra.mxu0 %v2254_v46  ;;  %750 = vmatpush1.bf16.msra.mxu1 %v2565_v47 }
  0x6b   :  { %503 = vmatprep.subr.bf16.mxu0 %v2256_v48  ;;  %751 = vmatprep.subr.bf16.mxu1 %v2568_v49 }
  0x6c   :  { %602 = vmatprep.mubr.bf16.mxu1 %v2262_v50 }
  0x6e   :  { %504 = vmatpush2.bf16.msra.mxu0 %v2260_v51  ;;  %752 = vmatpush1.bf16.msra.mxu1 %v2572_v52 }
  0x6f   :  { %505 = vmatprep.subr.bf16.mxu0 %v2264_v53  ;;  %753 = vmatprep.subr.bf16.mxu1 %v2576_v54 }
  0x71   :  { %603 = vmatmul.mubr.bf16.gmra.mxu1 %v2266_v55 }
  0x72   :  { %506 = vmatpush2.bf16.msra.mxu0 %v2269_v56  ;;  %754 = vmatpush1.bf16.msra.mxu1 %v2578_v57 }
  0x73   :  { %507 = vmatprep.subr.bf16.mxu0 %v2271_v58  ;;  %755 = vmatprep.subr.bf16.mxu1 %v2582_v59 }
  0x74   :  { %610 = vmatprep.mubr.bf16.mxu1 %v2277_v60 }
  0x76   :  { %508 = vmatpush2.bf16.msra.mxu0 %v2275_v61  ;;  %756 = vmatpush1.bf16.msra.mxu1 %v2584_v62 }
  0x77   :  { %509 = vmatprep.subr.bf16.mxu0 %v2279_v63  ;;  %757 = vmatprep.subr.bf16.mxu1 %v2587_v0  ;;  %v176_v63 = vsub.s32 1, %v2624_v10 }
  0x79   :  { %611 = vmatmul.mubr.bf16.gmra.mxu1 %v2281_v1  ;;  %v2697_v9 = vrot.slane %v2630_v12, %v176_v63 }
  0x7a   :  { %510 = vmatpush2.bf16.msra.mxu0 %v2284_v2  ;;  %758 = vmatpush1.bf16.msra.mxu1 %v2590_v3 }
  0x7b   :  { %511 = vmatprep.subr.bf16.mxu0 %v2286_v4  ;;  %759 = vmatprep.subr.bf16.mxu1 %v2592_v5 }
  0x7c   :  { %777 = vmatprep.mubr.bf16.mxu1 %v3050_v8 }
  0x7e   :  { %512 = vmatpush2.bf16.msra.mxu0 %v2290_v6  ;;  %760 = vmatpush1.bf16.msra.mxu1 %v2596_v7 }
  0x7f   :  { %915 = vmatprep.subr.bf16.mxu1 %v2546_v35  ;;  %1997 = vmatprep.subr.bf16.mxu0 %v2480_v15 }
  0x81   :  { %514 = vmatmul.mubr.bf16.vlgmr.msra.gmra.mxu0 %v2544_v34  ;;  %778 = vmatmul.mubr.bf16.vlgmr.msra.gmra.mxu1 %v3050_v8 }
  0x82   :  { %523 = vmatprep.mubr.bf16.mxu0 %v2553_v40  ;;  %916 = vmatpush1.bf16.msra.mxu1 %v2548_v37 }
  0x83   :  { %947 = vmatprep.mubr.bf16.mxu1 %v3050_v8  ;;  %917 = vmatprep.subr.bf16.mxu1 %v2550_v39 }
  0x84   :  { %1998 = vmatpush3.bf16.msra.mxu0 %v2635_v14 }
  0x85   :  { %1999 = vmatprep.subr.bf16.mxu0 %v2480_v15 }
  0x86   :  { %918 = vmatpush1.bf16.msra.mxu1 %v2556_v42 }
  0x87   :  { %919 = vmatprep.subr.bf16.mxu1 %v2561_v44 }
  0x88   :  { %2000 = vmatpush3.bf16.msra.mxu0 %v2640_v16 }
  0x89   :  { %524 = vmatmul.mubr.bf16.gmra.mxu0 %v2563_v45  ;;  %2001 = vmatprep.subr.bf16.mxu0 %v2480_v15 }
  0x8a   :  { %533 = vmatprep.mubr.bf16.mxu0 %v2262_v50  ;;  %920 = vmatpush1.bf16.msra.mxu1 %v2565_v47 }
  0x8b   :  { %921 = vmatprep.subr.bf16.mxu1 %v2568_v49 }
  0x8c   :  { %2002 = vmatpush3.bf16.msra.mxu0 %v2644_v17 }
  0x8d   :  { %2003 = vmatprep.subr.bf16.mxu0 %v2480_v15 }
  0x8e   :  { %922 = vmatpush1.bf16.msra.mxu1 %v2572_v52 }
  0x8f   :  { %923 = vmatprep.subr.bf16.mxu1 %v2576_v54 }
  0x90   :  { %2004 = vmatpush3.bf16.msra.mxu0 %v2649_v19 }
  0x91   :  { %534 = vmatmul.mubr.bf16.gmra.mxu0 %v2266_v55  ;;  %2005 = vmatprep.subr.bf16.mxu0 %v2480_v15 }
  0x92   :  { %543 = vmatprep.mubr.bf16.mxu0 %v2277_v60  ;;  %924 = vmatpush1.bf16.msra.mxu1 %v2578_v57 }
  0x93   :  { %925 = vmatprep.subr.bf16.mxu1 %v2582_v59 }
  0x94   :  { %2006 = vmatpush3.bf16.msra.mxu0 %v2656_v21 }
  0x95   :  { %2007 = vmatprep.subr.bf16.mxu0 %v2480_v15 }
  0x96   :  { %926 = vmatpush1.bf16.msra.mxu1 %v2584_v62 }
  0x97   :  { %927 = vmatprep.subr.bf16.mxu1 %v2587_v0 }
  0x98   :  { %2008 = vmatpush3.bf16.msra.mxu0 %v2660_v22 }
  0x99   :  { %544 = vmatmul.mubr.bf16.gmra.mxu0 %v2281_v1  ;;  %2009 = vmatprep.subr.bf16.mxu0 %v2480_v15 }
  0x9a   :  { %928 = vmatpush1.bf16.msra.mxu1 %v2590_v3  ;;  %2013 = vmatprep.mubr.msk.bf16.mxu0 %vm2481_vm0, %v2480_v15 }
  0x9b   :  { %929 = vmatprep.subr.bf16.mxu1 %v2592_v5 }
  0x9c   :  { %2010 = vmatpush3.bf16.msra.mxu0 %v2664_v23 }
  0x9d   :  { %2011 = vmatprep.subr.bf16.mxu0 %v2480_v15 }
  0x9e   :  { %930 = vmatpush1.bf16.msra.mxu1 %v2596_v7 }
  0x9f   :  { %1021 = vmatprep.subr.bf16.mxu1 %v2546_v35 }
  0xa0   :  { %2012 = vmatpush3.bf16.msra.mxu0 %v2668_v24 }
  0xa1   :  { %2017 = vmatprep.subr.bf16.mxu0 %v2480_v15 }
 0x121   :  { %v1892_v25 = vpop.f32.mrf.mxu1 }
 0x123   :  { %v1893_v26 = vpop.f32.mrf.mxu1 }
 0x124   :  { %v1894_v27 = vadd.f32 %v1893_v26, %v1892_v25 }
 0x125   :  { %v1895_v28 = vpop.f32.mrf.mxu1 }
 0x126   :  { %v2675_v29 = vadd.f32 %v1894_v27, %v2633_v13 }
 0x127   :  { %v1896_v30 = vpop.f32.mrf.mxu1 }
 0x128   :  { %v1897_v31 = vadd.f32 %v1896_v30, %v1895_v28 }
 0x129   :  { %v1898_v32 = vpop.f32.mrf.mxu1 }
 0x12a   :  { %v2678_v33 = vadd.f32 %v1897_v31, %v2633_v13 }
 0x12b   :  { %v1899_v34 = vpop.f32.mrf.mxu1 }
 0x12c   :  { %v1900_v36 = vadd.f32 %v1899_v34, %v1898_v32 }
 0x12d   :  { %v1901_v38 = vpop.f32.mrf.mxu1 }
 0x12e   :  { %v2681_v40 = vadd.f32 %v1900_v36, %v2633_v13 }
 0x12f   :  { %v1902_v41 = vpop.f32.mrf.mxu1 }
 0x130   :  { %v1903_v43 = vadd.f32 %v1902_v41, %v1901_v38 }
 0x131   :  { %v1904_v45 = vpop.f32.mrf.mxu1 }
 0x132   :  { %v2684_v46 = vadd.f32 %v1903_v43, %v2633_v13 }
 0x133   :  { %v1905_v48 = vpop.f32.mrf.mxu1 }
 0x134   :  { %v1906_v50 = vadd.f32 %v1905_v48, %v1904_v45 }
 0x135   :  { %v1907_v51 = vpop.f32.mrf.mxu1 }
 0x136   :  { %v2687_v53 = vadd.f32 %v1906_v50, %v2633_v13 }
 0x137   :  { %v1908_v55 = vpop.f32.mrf.mxu1 }
 0x138   :  { %v1909_v56 = vadd.f32 %v1908_v55, %v1907_v51 }
 0x139   :  { %v1910_v58 = vpop.f32.mrf.mxu1 }
 0x13a   :  { %v2690_v60 = vadd.f32 %v1909_v56, %v2633_v13 }
 0x13b   :  { %v1911_v61 = vpop.f32.mrf.mxu1 }
 0x13c   :  { %v1912_v1 = vadd.f32 %v1911_v61, %v1910_v58 }
 0x13d   :  { %v1913_v2 = vpop.f32.mrf.mxu1 }
 0x13e   :  { %v2694_v4 = vadd.f32 %v1912_v1, %v2633_v13 }
 0x13f   :  { %v1914_v6 = vpop.f32.mrf.mxu1 }
 0x140   :  { %v1915_v11 = vadd.f32 %v1914_v6, %v1913_v2 }
 0x141   :  { %v515_v18 = vpop.f32.mrf.mxu0  ;;  %v779_v26 = vpop.f32.mrf.mxu1 }
 0x142   :  { %v516_v25 = vadd.f32 %v515_v18, %v2652_v20  ;;  %v2701_v28 = vadd.f32 %v1915_v11, %v2633_v13 }
 0x143   :  { %v517_v27 = vpop.f32.mrf.mxu0  ;;  %v781_v31 = vpop.f32.mrf.mxu1 }
 0x144   :  { %v786_v30 = vadd.f32 %v779_v26, %v516_v25  ;;  %v518_v10 = vadd.f32 %v517_v27, %v2697_v9 }
 0x145   :  { %v519_v32 = vpop.f32.mrf.mxu0  ;;  %v783_v12 = vpop.f32.mrf.mxu1 }
 0x146   :  { %v791_v34 = vadd.f32 %v781_v31, %v518_v10  ;;  %v2705_v36 = vadd.f32 %v519_v32, %v2652_v20 }
 0x147   :  { %v521_v38 = vpop.f32.mrf.mxu0  ;;  %v784_v45 = vpop.f32.mrf.mxu1 }
 0x148   :  { %v792_v41 = vmul.f32 0.16666667, %v791_v34  ;;  %v2708_v43 = vadd.f32 %v521_v38, %v2697_v9 }
 0x149   :  { %v525_v48 = vpop.f32.mrf.mxu0 }
 0x14a   :  { %v793_v50 = vadd.f32 0.5, %v792_v41  ;;  %v2711_v13 = vadd.f32 %v525_v48, %v2652_v20 }
 0x14b   :  { %v527_v51 = vpop.f32.mrf.mxu0 }
 0x14c   :  { %v794_v55 = vmax.f32 %v793_v50, 0.0  ;;  %v2714_v56 = vadd.f32 %v527_v51, %v2697_v9  ;;  %v787_v51 = vmul.f32 0.16666667, %v786_v30  ;;  %v3052_v30 = vmov 0  }
 0x14d   :  { %v529_v58 = vpop.f32.mrf.mxu0 }
 0x14e   :  { %v795_v61 = vmin.f32 %v794_v55, 1.0  ;;  %v2717_v63 = vadd.f32 %v529_v58, %v2652_v20 }
 0x14f   :  { %v531_v1 = vpop.f32.mrf.mxu0 }
 0x150   :  { %v796_v2 = vmul.f32 0.0, %v795_v61  ;;  %v2720_v6 = vadd.f32 %v531_v1, %v2697_v9  ;;  %v788_v1 = vadd.f32 0.5, %v787_v51 }
 0x151   :  { %v535_v11 = vpop.f32.mrf.mxu0 }
 0x152   :  { %v797_v18 = vpack.c.bf16 %v796_v2, %v796_v2  ;;  %v2723_v25 = vadd.f32 %v535_v11, %v2652_v20 }
 0x153   :  { %v537_v26 = vpop.f32.mrf.mxu0 }
 0x154   :  { %2014 = vmatmul.mubr.bf16.vlgmr.msra.gmra.mxu0 %v797_v18  ;;  %v2726_v27 = vadd.f32 %v537_v26, %v2697_v9  ;;  %v789_v18 = vmax.f32 %v788_v1, 0.0 }
 0x155   :  { %v539_v10 = vpop.f32.mrf.mxu0  ;;  %2018 = vmatpush3.bf16.msra.mxu0 %v2635_v14  ;;  %2033 = vmatprep.mubr.msk.bf16.mxu0 %vm2481_vm0, %v2480_v15 }
 0x156   :  { %v2732_v31 = vadd.f32 %v539_v10, %v2652_v20  ;;  %2019 = vmatprep.subr.bf16.mxu0 %v2480_v15  ;;  %v790_v26 = vmin.f32 %v789_v18, 1.0 }
 0x157   :  { %v541_v32 = vpop.f32.mrf.mxu0 }
 0x158   :  { %v2736_v34 = vadd.f32 %v541_v32, %v2697_v9  ;;  %v905_v10 = vsub.f32 1.0, %v790_v26 }
 0x159   :  { %v545_v12 = vpop.f32.mrf.mxu0  ;;  %2020 = vmatpush3.bf16.msra.mxu0 %v2640_v16 }
 0x15a   :  { %v2740_v38 = vadd.f32 %v545_v12, %v2652_v20  ;;  %2021 = vmatprep.subr.bf16.mxu0 %v2480_v15  ;;  %v904_v12 = vmul.f32 0.0, %v790_v26 }
 0x15b   :  { %v547_v41 = vpop.f32.mrf.mxu0 }
 0x15c   :  { %v2744_v45 = vadd.f32 %v547_v41, %v2697_v9 }
 0x15d   :  { %v549_v48 = vpop.f32.mrf.mxu0  ;;  %2022 = vmatpush3.bf16.msra.mxu0 %v2644_v17 }
 0x15e   :  { %v2748_v50 = vadd.f32 %v549_v48, %v2652_v20  ;;  %2023 = vmatprep.subr.bf16.mxu0 %v2480_v15 }
 0x15f   :  { %v2761_v20 = vpop.f32.mrf.mxu0 }
 0x161   :  { %2024 = vmatpush3.bf16.msra.mxu0 %v2649_v19 }
 0x162   :  { %2025 = vmatprep.subr.bf16.mxu0 %v2480_v15 }
 0x165   :  { %2026 = vmatpush3.bf16.msra.mxu0 %v2656_v21 }
 0x166   :  { %2027 = vmatprep.subr.bf16.mxu0 %v2480_v15 }
 0x169   :  { %2028 = vmatpush3.bf16.msra.mxu0 %v2660_v22 }
 0x16a   :  { %2029 = vmatprep.subr.bf16.mxu0 %v2480_v15 }
 0x16d   :  { %2030 = vmatpush3.bf16.msra.mxu0 %v2664_v23 }
 0x16e   :  { %2031 = vmatprep.subr.bf16.mxu0 %v2480_v15 }
 0x171   :  { %2032 = vmatpush3.bf16.msra.mxu0 %v2668_v24 }
 0x172   :  { %2037 = vmatprep.subr.bf16.mxu0 %v2480_v15 }
 0x214   :  { %v896_v55 = vpop.f32.mrf.mxu0 }
 0x215   :  { %v902_v58 = vadd.f32 %v896_v55, %v2675_v29 }
 0x216   :  { %v2015_v61 = vpop.f32.mrf.mxu0 }
 0x217   :  { %2308 = vtanh.f32 %v902_v58 }
 0x218   :  { %v899_v2 = vpop.f32.mrf.mxu0 }
 0x21a   :  { %v2016_v11 = vpop.f32.mrf.mxu0 }
 0x224   :  { %v2309_v32 = vpop.eup %2308 }
 0x225   :  { %v906_v41 = vmul.f32 %v2309_v32, %v905_v10 }
 0x227   :  { %v907_v48 = vadd.f32 %v906_v41, %v904_v12 }
 0x229   :  { %v914_v8 = vpack.c.bf16 %v907_v48, %v907_v48 }
 0x22b   :  { %948 = vmatmul.mubr.bf16.vlgmr.msra.gmra.mxu1 %v914_v8 }
 0x22c   :  { %1022 = vmatpush1.bf16.msra.mxu1 %v2548_v37  ;;  %1053 = vmatprep.mubr.bf16.mxu1 %v3052_v30 }
 0x22d   :  { %1023 = vmatprep.subr.bf16.mxu1 %v2550_v39 }
 0x230   :  { %1024 = vmatpush1.bf16.msra.mxu1 %v2556_v42 }
 0x231   :  { %1025 = vmatprep.subr.bf16.mxu1 %v2561_v44 }
 0x234   :  { %1026 = vmatpush1.bf16.msra.mxu1 %v2565_v47 }
 0x235   :  { %1027 = vmatprep.subr.bf16.mxu1 %v2568_v49 }
 0x238   :  { %1028 = vmatpush1.bf16.msra.mxu1 %v2572_v52 }
 0x239   :  { %1029 = vmatprep.subr.bf16.mxu1 %v2576_v54 }
 0x23c   :  { %1030 = vmatpush1.bf16.msra.mxu1 %v2578_v57 }
 0x23d   :  { %1031 = vmatprep.subr.bf16.mxu1 %v2582_v59 }
 0x240   :  { %1032 = vmatpush1.bf16.msra.mxu1 %v2584_v62 }
 0x241   :  { %1033 = vmatprep.subr.bf16.mxu1 %v2587_v0 }
 0x244   :  { %1034 = vmatpush1.bf16.msra.mxu1 %v2590_v3 }
 0x245   :  { %1035 = vmatprep.subr.bf16.mxu1 %v2592_v5 }
 0x248   :  { %1036 = vmatpush1.bf16.msra.mxu1 %v2596_v7 }
 0x249   :  { %1127 = vmatprep.subr.bf16.mxu1 %v2546_v35 }
 0x2eb   :  { %v949_v8 = vpop.f32.mrf.mxu1 }
 0x2ec   :  { %v956_v29 = vadd.f32 %v949_v8, %v2705_v36 }
 0x2ed   :  { %v951_v51 = vpop.f32.mrf.mxu1 }
 0x2ee   :  { %v961_v55 = vadd.f32 %v951_v51, %v2708_v43  ;;  %v957_v36 = vmul.f32 0.16666667, %v956_v29 }
 0x2ef   :  { %v953_v58 = vpop.f32.mrf.mxu1 }
 0x2f0   :  { %v962_v61 = vmul.f32 0.16666667, %v961_v55  ;;  %v958_v41 = vadd.f32 0.5, %v957_v36 }
 0x2f1   :  { %v954_v1 = vpop.f32.mrf.mxu1 }
 0x2f2   :  { %v963_v2 = vadd.f32 0.5, %v962_v61  ;;  %v959_v55 = vmax.f32 %v958_v41, 0.0 }
 0x2f4   :  { %v964_v11 = vmax.f32 %v963_v2, 0.0  ;;  %v960_v58 = vmin.f32 %v959_v55, 1.0 }
 0x2f6   :  { %v965_v18 = vmin.f32 %v964_v11, 1.0  ;;  %v1011_v61 = vsub.f32 1.0, %v960_v58  ;;  %v1010_v2 = vmul.f32 %v960_v58, %v907_v48 }
 0x2f8   :  { %v966_v26 = vmul.f32 %v965_v18, %v907_v48 }
 0x2fa   :  { %v967_v10 = vpack.c.bf16 %v966_v26, %v966_v26 }
 0x2fc   :  { %2034 = vmatmul.mubr.bf16.vlgmr.msra.gmra.mxu0 %v967_v10 }
 0x2fd   :  { %2038 = vmatpush3.bf16.msra.mxu0 %v2635_v14  ;;  %2053 = vmatprep.mubr.msk.bf16.mxu0 %vm2481_vm0, %v2480_v15 }
 0x2fe   :  { %2039 = vmatprep.subr.bf16.mxu0 %v2480_v15 }
 0x301   :  { %2040 = vmatpush3.bf16.msra.mxu0 %v2640_v16 }
 0x302   :  { %2041 = vmatprep.subr.bf16.mxu0 %v2480_v15 }
 0x305   :  { %2042 = vmatpush3.bf16.msra.mxu0 %v2644_v17 }
 0x306   :  { %2043 = vmatprep.subr.bf16.mxu0 %v2480_v15 }
 0x309   :  { %2044 = vmatpush3.bf16.msra.mxu0 %v2649_v19 }
 0x30a   :  { %2045 = vmatprep.subr.bf16.mxu0 %v2480_v15 }
 0x30d   :  { %2046 = vmatpush3.bf16.msra.mxu0 %v2656_v21 }
 0x30e   :  { %2047 = vmatprep.subr.bf16.mxu0 %v2480_v15 }
 0x311   :  { %2048 = vmatpush3.bf16.msra.mxu0 %v2660_v22 }
 0x312   :  { %2049 = vmatprep.subr.bf16.mxu0 %v2480_v15 }
 0x315   :  { %2050 = vmatpush3.bf16.msra.mxu0 %v2664_v23 }
 0x316   :  { %2051 = vmatprep.subr.bf16.mxu0 %v2480_v15 }
 0x319   :  { %2052 = vmatpush3.bf16.msra.mxu0 %v2668_v24 }
 0x31a   :  { %2057 = vmatprep.subr.bf16.mxu0 %v2480_v15 }
 0x3bc   :  { %v1002_v43 = vpop.f32.mrf.mxu0 }
 0x3bd   :  { %v1008_v32 = vadd.f32 %v1002_v43, %v2678_v33 }
 0x3be   :  { %v2035_v12 = vpop.f32.mrf.mxu0 }
 0x3bf   :  { %2310 = vtanh.f32 %v1008_v32 }
 0x3c0   :  { %v1005_v8 = vpop.f32.mrf.mxu0 }
 0x3c2   :  { %v2036_v51 = vpop.f32.mrf.mxu0 }
 0x3cc   :  { %v2311_v1 = vpop.eup %2310 }
 0x3cd   :  { %v1012_v11 = vmul.f32 %v2311_v1, %v1011_v61 }
 0x3cf   :  { %v1013_v18 = vadd.f32 %v1012_v11, %v1010_v2 }
 0x3d1   :  { %v1020_v26 = vpack.c.bf16 %v1013_v18, %v1013_v18 }
 0x3d3   :  { %1054 = vmatmul.mubr.bf16.vlgmr.msra.gmra.mxu1 %v1020_v26 }
 0x3d4   :  { %1128 = vmatpush1.bf16.msra.mxu1 %v2548_v37  ;;  %1159 = vmatprep.mubr.bf16.mxu1 %v3052_v30 }
 0x3d5   :  { %1129 = vmatprep.subr.bf16.mxu1 %v2550_v39 }
 0x3d8   :  { %1130 = vmatpush1.bf16.msra.mxu1 %v2556_v42 }
 0x3d9   :  { %1131 = vmatprep.subr.bf16.mxu1 %v2561_v44 }
 0x3dc   :  { %1132 = vmatpush1.bf16.msra.mxu1 %v2565_v47 }
 0x3dd   :  { %1133 = vmatprep.subr.bf16.mxu1 %v2568_v49 }
 0x3e0   :  { %1134 = vmatpush1.bf16.msra.mxu1 %v2572_v52 }
 0x3e1   :  { %1135 = vmatprep.subr.bf16.mxu1 %v2576_v54 }
 0x3e4   :  { %1136 = vmatpush1.bf16.msra.mxu1 %v2578_v57 }
 0x3e5   :  { %1137 = vmatprep.subr.bf16.mxu1 %v2582_v59 }
 0x3e8   :  { %1138 = vmatpush1.bf16.msra.mxu1 %v2584_v62 }
 0x3e9   :  { %1139 = vmatprep.subr.bf16.mxu1 %v2587_v0 }
 0x3ec   :  { %1140 = vmatpush1.bf16.msra.mxu1 %v2590_v3 }
 0x3ed   :  { %1141 = vmatprep.subr.bf16.mxu1 %v2592_v5 }
 0x3f0   :  { %1142 = vmatpush1.bf16.msra.mxu1 %v2596_v7 }
 0x3f1   :  { %1233 = vmatprep.subr.bf16.mxu1 %v2546_v35 }
 0x493   :  { %v1055_v33 = vpop.f32.mrf.mxu1 }
 0x494   :  { %v1062_v48 = vadd.f32 %v1055_v33, %v2711_v13 }
 0x495   :  { %v1057_v29 = vpop.f32.mrf.mxu1 }
 0x496   :  { %v1067_v10 = vadd.f32 %v1057_v29, %v2714_v56  ;;  %v1063_v13 = vmul.f32 0.16666667, %v1062_v48 }
 0x497   :  { %v1059_v36 = vpop.f32.mrf.mxu1 }
 0x498   :  { %v1068_v43 = vmul.f32 0.16666667, %v1067_v10  ;;  %v1064_v1 = vadd.f32 0.5, %v1063_v13 }
 0x499   :  { %v1060_v32 = vpop.f32.mrf.mxu1 }
 0x49a   :  { %v1069_v12 = vadd.f32 0.5, %v1068_v43  ;;  %v1065_v26 = vmax.f32 %v1064_v1, 0.0 }
 0x49c   :  { %v1070_v41 = vmax.f32 %v1069_v12, 0.0  ;;  %v1066_v33 = vmin.f32 %v1065_v26, 1.0 }
 0x49e   :  { %v1071_v8 = vmin.f32 %v1070_v41, 1.0  ;;  %v1117_v29 = vsub.f32 1.0, %v1066_v33  ;;  %v1116_v36 = vmul.f32 %v1066_v33, %v1013_v18 }
 0x4a0   :  { %v1072_v51 = vmul.f32 %v1071_v8, %v1013_v18 }
 0x4a2   :  { %v1073_v55 = vpack.c.bf16 %v1072_v51, %v1072_v51 }
 0x4a4   :  { %2054 = vmatmul.mubr.bf16.vlgmr.msra.gmra.mxu0 %v1073_v55 }
 0x4a5   :  { %2058 = vmatpush3.bf16.msra.mxu0 %v2635_v14  ;;  %2073 = vmatprep.mubr.msk.bf16.mxu0 %vm2481_vm0, %v2480_v15 }
 0x4a6   :  { %2059 = vmatprep.subr.bf16.mxu0 %v2480_v15 }
 0x4a9   :  { %2060 = vmatpush3.bf16.msra.mxu0 %v2640_v16 }
 0x4aa   :  { %2061 = vmatprep.subr.bf16.mxu0 %v2480_v15 }
 0x4ad   :  { %2062 = vmatpush3.bf16.msra.mxu0 %v2644_v17 }
 0x4ae   :  { %2063 = vmatprep.subr.bf16.mxu0 %v2480_v15 }
 0x4b1   :  { %2064 = vmatpush3.bf16.msra.mxu0 %v2649_v19 }
 0x4b2   :  { %2065 = vmatprep.subr.bf16.mxu0 %v2480_v15 }
 0x4b5   :  { %2066 = vmatpush3.bf16.msra.mxu0 %v2656_v21 }
 0x4b6   :  { %2067 = vmatprep.subr.bf16.mxu0 %v2480_v15 }
 0x4b9   :  { %2068 = vmatpush3.bf16.msra.mxu0 %v2660_v22 }
 0x4ba   :  { %2069 = vmatprep.subr.bf16.mxu0 %v2480_v15 }
 0x4bd   :  { %2070 = vmatpush3.bf16.msra.mxu0 %v2664_v23 }
 0x4be   :  { %2071 = vmatprep.subr.bf16.mxu0 %v2480_v15 }
 0x4c1   :  { %2072 = vmatpush3.bf16.msra.mxu0 %v2668_v24 }
 0x4c2   :  { %2077 = vmatprep.subr.bf16.mxu0 %v2480_v15 }
 0x564   :  { %v1108_v56 = vpop.f32.mrf.mxu0 }
 0x565   :  { %v1114_v58 = vadd.f32 %v1108_v56, %v2681_v40 }
 0x566   :  { %v2055_v61 = vpop.f32.mrf.mxu0 }
 0x567   :  { %2312 = vtanh.f32 %v1114_v58 }
 0x568   :  { %v1111_v2 = vpop.f32.mrf.mxu0 }
 0x56a   :  { %v2056_v11 = vpop.f32.mrf.mxu0 }
 0x574   :  { %v2313_v10 = vpop.eup %2312 }
 0x575   :  { %v1118_v43 = vmul.f32 %v2313_v10, %v1117_v29 }
 0x577   :  { %v1119_v32 = vadd.f32 %v1118_v43, %v1116_v36 }
 0x579   :  { %v1126_v12 = vpack.c.bf16 %v1119_v32, %v1119_v32 }
 0x57b   :  { %1160 = vmatmul.mubr.bf16.vlgmr.msra.gmra.mxu1 %v1126_v12 }
 0x57c   :  { %1234 = vmatpush1.bf16.msra.mxu1 %v2548_v37  ;;  %1265 = vmatprep.mubr.bf16.mxu1 %v3052_v30 }
 0x57d   :  { %1235 = vmatprep.subr.bf16.mxu1 %v2550_v39 }
 0x580   :  { %1236 = vmatpush1.bf16.msra.mxu1 %v2556_v42 }
 0x581   :  { %1237 = vmatprep.subr.bf16.mxu1 %v2561_v44 }
 0x584   :  { %1238 = vmatpush1.bf16.msra.mxu1 %v2565_v47 }
 0x585   :  { %1239 = vmatprep.subr.bf16.mxu1 %v2568_v49 }
 0x588   :  { %1240 = vmatpush1.bf16.msra.mxu1 %v2572_v52 }
 0x589   :  { %1241 = vmatprep.subr.bf16.mxu1 %v2576_v54 }
 0x58c   :  { %1242 = vmatpush1.bf16.msra.mxu1 %v2578_v57 }
 0x58d   :  { %1243 = vmatprep.subr.bf16.mxu1 %v2582_v59 }
 0x590   :  { %1244 = vmatpush1.bf16.msra.mxu1 %v2584_v62 }
 0x591   :  { %1245 = vmatprep.subr.bf16.mxu1 %v2587_v0 }
 0x594   :  { %1246 = vmatpush1.bf16.msra.mxu1 %v2590_v3 }
 0x595   :  { %1247 = vmatprep.subr.bf16.mxu1 %v2592_v5 }
 0x598   :  { %1248 = vmatpush1.bf16.msra.mxu1 %v2596_v7 }
 0x599   :  { %1339 = vmatprep.subr.bf16.mxu1 %v2546_v35 }
 0x63b   :  { %v1161_v40 = vpop.f32.mrf.mxu1 }
 0x63c   :  { %v1168_v18 = vadd.f32 %v1161_v40, %v2717_v63 }
 0x63d   :  { %v1163_v48 = vpop.f32.mrf.mxu1 }
 0x63e   :  { %v1173_v41 = vadd.f32 %v1163_v48, %v2720_v6  ;;  %v1169_v35 = vmul.f32 0.16666667, %v1168_v18 }
 0x63f   :  { %v1165_v8 = vpop.f32.mrf.mxu1 }
 0x640   :  { %v1174_v51 = vmul.f32 0.16666667, %v1173_v41  ;;  %v1170_v11 = vadd.f32 0.5, %v1169_v35 }
 0x641   :  { %v1166_v55 = vpop.f32.mrf.mxu1 }
 0x642   :  { %v1175_v13 = vadd.f32 0.5, %v1174_v51  ;;  %v1171_v29 = vmax.f32 %v1170_v11, 0.0 }
 0x644   :  { %v1176_v56 = vmax.f32 %v1175_v13, 0.0  ;;  %v1172_v10 = vmin.f32 %v1171_v29, 1.0  ;;  %v2935_v29 = vld [vmem:[#allocation8 + $0x60] ss:$8 sps:$4 sm:$0xff]  }
 0x646   :  { %v1177_v58 = vmin.f32 %v1176_v56, 1.0  ;;  %v1223_v36 = vsub.f32 1.0, %v1172_v10  ;;  %v1222_v12 = vmul.f32 %v1172_v10, %v1119_v32  ;;  %v2938_v10 = vld [vmem:[#allocation8 + $0x54] ss:$8 sps:$4 sm:$0xff]  }
 0x648   :  { %v1178_v61 = vmul.f32 %v1177_v58, %v1119_v32 }
 0x64a   :  { %v1179_v1 = vpack.c.bf16 %v1178_v61, %v1178_v61 }
 0x64c   :  { %2074 = vmatmul.mubr.bf16.vlgmr.msra.gmra.mxu0 %v1179_v1 }
 0x64d   :  { %2078 = vmatpush3.bf16.msra.mxu0 %v2635_v14  ;;  %2093 = vmatprep.mubr.msk.bf16.mxu0 %vm2481_vm0, %v2480_v15 }
 0x64e   :  { %2079 = vmatprep.subr.bf16.mxu0 %v2480_v15 }
 0x651   :  { %2080 = vmatpush3.bf16.msra.mxu0 %v2640_v16 }
 0x652   :  { %2081 = vmatprep.subr.bf16.mxu0 %v2480_v15 }
 0x655   :  { %2082 = vmatpush3.bf16.msra.mxu0 %v2644_v17 }
 0x656   :  { %2083 = vmatprep.subr.bf16.mxu0 %v2480_v15 }
 0x659   :  { %2084 = vmatpush3.bf16.msra.mxu0 %v2649_v19 }
 0x65a   :  { %2085 = vmatprep.subr.bf16.mxu0 %v2480_v15 }
 0x65d   :  { %2086 = vmatpush3.bf16.msra.mxu0 %v2656_v21 }
 0x65e   :  { %2087 = vmatprep.subr.bf16.mxu0 %v2480_v15 }
 0x661   :  { %2088 = vmatpush3.bf16.msra.mxu0 %v2660_v22 }
 0x662   :  { %2089 = vmatprep.subr.bf16.mxu0 %v2480_v15 }
 0x665   :  { %2090 = vmatpush3.bf16.msra.mxu0 %v2664_v23 }
 0x666   :  { %2091 = vmatprep.subr.bf16.mxu0 %v2480_v15 }
 0x669   :  { %2092 = vmatpush3.bf16.msra.mxu0 %v2668_v24 }
 0x66a   :  { %2097 = vmatprep.subr.bf16.mxu0 %v2480_v15 }
 0x70c   :  { %v1214_v63 = vpop.f32.mrf.mxu0 }
 0x70d   :  { %v1220_v6 = vadd.f32 %v1214_v63, %v2684_v46 }
 0x70e   :  { %v2075_v2 = vpop.f32.mrf.mxu0 }
 0x70f   :  { %2314 = vtanh.f32 %v1220_v6 }
 0x710   :  { %v1217_v26 = vpop.f32.mrf.mxu0 }
 0x712   :  { %v2076_v33 = vpop.f32.mrf.mxu0 }
 0x713   :  { %v2928_v33 = vld [vmem:[#allocation8 + $0x70] ss:$8 sps:$4 sm:$0xff]  }
 0x71c   :  { %v2315_v43 = vpop.eup %2314 }
 0x71d   :  { %v1224_v40 = vmul.f32 %v2315_v43, %v1223_v36  ;;  %v2941_v36 = vld [vmem:[#allocation8 + $0x50] ss:$8 sps:$4 sm:$0xff]   ;;  %v2944_v43 = vld [vmem:[#allocation8 + $0x44] ss:$8 sps:$4 sm:$0xff]  }
 0x71f   :  { %v2878_v48 = vadd.f32 %v1224_v40, %v1222_v12  ;;  %v2947_v12 = vld [vmem:[#allocation8 + $0x40] ss:$8 sps:$4 sm:$0xff]   ;;  %v2950_v40 = vld [vmem:[#allocation8 + $0x34] ss:$8 sps:$4 sm:$0xff]  }
 0x721   :  { %v1232_v41 = vpack.c.bf16 %v2878_v48, %v2878_v48 }
 0x723   :  { %1266 = vmatmul.mubr.bf16.vlgmr.msra.gmra.mxu1 %v1232_v41 }
 0x724   :  { %1340 = vmatpush1.bf16.msra.mxu1 %v2548_v37  ;;  %1371 = vmatprep.mubr.bf16.mxu1 %v3052_v30  ;;  %v2898_v37 = vld [vmem:[#allocation8 + $0x74] ss:$8 sps:$4 sm:$0xff]  }
 0x725   :  { %1341 = vmatprep.subr.bf16.mxu1 %v2550_v39 }
 0x728   :  { %1342 = vmatpush1.bf16.msra.mxu1 %v2556_v42 }
 0x729   :  { %1343 = vmatprep.subr.bf16.mxu1 %v2561_v44 }
 0x72c   :  { %1344 = vmatpush1.bf16.msra.mxu1 %v2565_v47 }
 0x72d   :  { %1345 = vmatprep.subr.bf16.mxu1 %v2568_v49 }
 0x730   :  { %1346 = vmatpush1.bf16.msra.mxu1 %v2572_v52 }
 0x731   :  { %1347 = vmatprep.subr.bf16.mxu1 %v2576_v54 }
 0x734   :  { %1348 = vmatpush1.bf16.msra.mxu1 %v2578_v57 }
 0x735   :  { %1349 = vmatprep.subr.bf16.mxu1 %v2582_v59 }
 0x738   :  { %1350 = vmatpush1.bf16.msra.mxu1 %v2584_v62 }
 0x739   :  { %1351 = vmatprep.subr.bf16.mxu1 %v2587_v0 }
 0x73c   :  { %1352 = vmatpush1.bf16.msra.mxu1 %v2590_v3 }
 0x73d   :  { %1353 = vmatprep.subr.bf16.mxu1 %v2592_v5 }
 0x740   :  { %1354 = vmatpush1.bf16.msra.mxu1 %v2596_v7 }
 0x741   :  { %1445 = vmatprep.subr.bf16.mxu1 %v2898_v37 }
 0x7e3   :  { %v1267_v39 = vpop.f32.mrf.mxu1 }
 0x7e4   :  { %v1274_v42 = vadd.f32 %v1267_v39, %v2723_v25 }
 0x7e5   :  { %v1269_v44 = vpop.f32.mrf.mxu1 }
 0x7e6   :  { %v1279_v47 = vadd.f32 %v1269_v44, %v2726_v27  ;;  %v1275_v25 = vmul.f32 0.16666667, %v1274_v42 }
 0x7e7   :  { %v1271_v49 = vpop.f32.mrf.mxu1 }
 0x7e8   :  { %v1280_v52 = vmul.f32 0.16666667, %v1279_v47  ;;  %v1276_v13 = vadd.f32 0.5, %v1275_v25 }
 0x7e9   :  { %v1272_v54 = vpop.f32.mrf.mxu1 }
 0x7ea   :  { %v1281_v57 = vadd.f32 0.5, %v1280_v52  ;;  %v1277_v61 = vmax.f32 %v1276_v13, 0.0 }
 0x7ec   :  { %v1282_v46 = vmax.f32 %v1281_v57, 0.0  ;;  %v1278_v1 = vmin.f32 %v1277_v61, 1.0  ;;  %v2338_v61 = vld [vmem:[#allocation8 + $0x4] ss:$8 sps:$4 sm:$0xff]  }
 0x7ee   :  { %v1283_v32 = vmin.f32 %v1282_v46, 1.0  ;;  %v1329_v35 = vsub.f32 1.0, %v1278_v1  ;;  %v1328_v6 = vmul.f32 %v1278_v1, %v2878_v48  ;;  %v2339_v1 = vld [vmem:[#allocation8] ss:$8 sps:$4 sm:$0xff]  }
 0x7f0   :  { %v1284_v18 = vmul.f32 %v1283_v32, %v2878_v48  ;;  %v2953_v48 = vld [vmem:[#allocation8 + $0x30] ss:$8 sps:$4 sm:$0xff]  }
 0x7f2   :  { %v1285_v8 = vpack.c.bf16 %v1284_v18, %v1284_v18 }
 0x7f4   :  { %2094 = vmatmul.mubr.bf16.vlgmr.msra.gmra.mxu0 %v1285_v8 }
 0x7f5   :  { %2098 = vmatpush3.bf16.msra.mxu0 %v2635_v14  ;;  %2113 = vmatprep.mubr.msk.bf16.mxu0 %vm2481_vm0, %v2480_v15 }
 0x7f6   :  { %2099 = vmatprep.subr.bf16.mxu0 %v2480_v15 }
 0x7f9   :  { %2100 = vmatpush3.bf16.msra.mxu0 %v2640_v16 }
 0x7fa   :  { %2101 = vmatprep.subr.bf16.mxu0 %v2480_v15 }
 0x7fd   :  { %2102 = vmatpush3.bf16.msra.mxu0 %v2644_v17 }
 0x7fe   :  { %2103 = vmatprep.subr.bf16.mxu0 %v2480_v15 }
 0x801   :  { %2104 = vmatpush3.bf16.msra.mxu0 %v2649_v19 }
 0x802   :  { %2105 = vmatprep.subr.bf16.mxu0 %v2480_v15 }
 0x805   :  { %2106 = vmatpush3.bf16.msra.mxu0 %v2656_v21 }
 0x806   :  { %2107 = vmatprep.subr.bf16.mxu0 %v2480_v15 }
 0x809   :  { %2108 = vmatpush3.bf16.msra.mxu0 %v2660_v22 }
 0x80a   :  { %2109 = vmatprep.subr.bf16.mxu0 %v2480_v15 }
 0x80d   :  { %2110 = vmatpush3.bf16.msra.mxu0 %v2664_v23 }
 0x80e   :  { %2111 = vmatprep.subr.bf16.mxu0 %v2480_v15 }
 0x811   :  { %2112 = vmatpush3.bf16.msra.mxu0 %v2668_v24 }
 0x812   :  { %2117 = vmatprep.subr.bf16.mxu0 %v2480_v15 }
 0x8b4   :  { %v1320_v27 = vpop.f32.mrf.mxu0 }
 0x8b5   :  { %v1326_v51 = vadd.f32 %v1320_v27, %v2687_v53  ;;  %v2932_v53 = vld [vmem:[#allocation8 + $0x64] ss:$8 sps:$4 sm:$0xff]  }
 0x8b6   :  { %v2095_v55 = vpop.f32.mrf.mxu0 }
 0x8b7   :  { %2316 = vtanh.f32 %v1326_v51 }
 0x8b8   :  { %v1323_v56 = vpop.f32.mrf.mxu0 }
 0x8b9   :  { %v2335_v56 = vld [vmem:[#allocation8 + $0x20] ss:$8 sps:$4 sm:$0xff]  }
 0x8ba   :  { %v2096_v58 = vpop.f32.mrf.mxu0 }
 0x8bb   :  { %v2337_v58 = vld [vmem:[#allocation8 + $0x10] ss:$8 sps:$4 sm:$0xff]  }
 0x8c4   :  { %v2317_v63 = vpop.eup %2316 }
 0x8c5   :  { %v1330_v2 = vmul.f32 %v2317_v63, %v1329_v35 }
 0x8c7   :  { %v2924_v11 = vadd.f32 %v1330_v2, %v1328_v6 }
 0x8c9   :  { %v1338_v26 = vpack.c.bf16 %v2924_v11, %v2924_v11 }
 0x8cb   :  { %1372 = vmatmul.mubr.bf16.vlgmr.msra.gmra.mxu1 %v1338_v26 }
 0x8cc   :  { %1446 = vmatpush1.bf16.msra.mxu1 %v2928_v33  ;;  %1477 = vmatprep.mubr.bf16.mxu1 %v3052_v30 }
 0x8cd   :  { %1447 = vmatprep.subr.bf16.mxu1 %v2932_v53 }
 0x8d0   :  { %1448 = vmatpush1.bf16.msra.mxu1 %v2935_v29 }
 0x8d1   :  { %1449 = vmatprep.subr.bf16.mxu1 %v2938_v10 }
 0x8d4   :  { %1450 = vmatpush1.bf16.msra.mxu1 %v2941_v36 }
 0x8d5   :  { %1451 = vmatprep.subr.bf16.mxu1 %v2944_v43 }
 0x8d8   :  { %1452 = vmatpush1.bf16.msra.mxu1 %v2947_v12 }
 0x8d9   :  { %1453 = vmatprep.subr.bf16.mxu1 %v2950_v40 }
 0x8dc   :  { %1454 = vmatpush1.bf16.msra.mxu1 %v2953_v48 }
 0x8dd   :  { %1455 = vmatprep.subr.bf16.mxu1 %v2582_v59 }
 0x8e0   :  { %1456 = vmatpush1.bf16.msra.mxu1 %v2584_v62 }
 0x8e1   :  { %1457 = vmatprep.subr.bf16.mxu1 %v2587_v0 }
 0x8e4   :  { %1458 = vmatpush1.bf16.msra.mxu1 %v2590_v3 }
 0x8e5   :  { %1459 = vmatprep.subr.bf16.mxu1 %v2592_v5 }
 0x8e8   :  { %1460 = vmatpush1.bf16.msra.mxu1 %v2596_v7 }
 0x8e9   :  { %1551 = vmatprep.subr.bf16.mxu1 %v2898_v37 }
 0x98b   :  { %v1373_v41 = vpop.f32.mrf.mxu1 }
 0x98c   :  { %v1380_v39 = vadd.f32 %v1373_v41, %v2732_v31 }
 0x98d   :  { %v1375_v42 = vpop.f32.mrf.mxu1 }
 0x98e   :  { %v1385_v44 = vadd.f32 %v1375_v42, %v2736_v34  ;;  %v1381_v5 = vmul.f32 0.16666667, %v1380_v39 }
 0x98f   :  { %v1377_v47 = vpop.f32.mrf.mxu1 }
 0x990   :  { %v1386_v59 = vmul.f32 0.16666667, %v1385_v44  ;;  %v1382_v37 = vadd.f32 0.5, %v1381_v5  ;;  %v552_v47 = vadd.f32 %v2761_v20, %v2697_v9  ;;  %v2304_v9 = vld [vmem:[#allocation11 + $0x18] sm:$0xff]   ;;  %v2306_v20 = vld [vmem:[#allocation11 + $0x8] sm:$0xff]  }
 0x991   :  { %v1378_v49 = vpop.f32.mrf.mxu1 }
 0x992   :  { %v1387_v62 = vadd.f32 0.5, %v1386_v59  ;;  %v1383_v32 = vmax.f32 %v1382_v37, 0.0  ;;  %v2302_v37 = vld [vmem:[#allocation11 + $0x28] sm:$0xff]  }
 0x994   :  { %v1388_v52 = vmax.f32 %v1387_v62, 0.0  ;;  %v1384_v18 = vmin.f32 %v1383_v32, 1.0 }
 0x996   :  { %v1389_v0 = vmin.f32 %v1388_v52, 1.0  ;;  %v1435_v8 = vsub.f32 1.0, %v1384_v18  ;;  %v1434_v27 = vmul.f32 %v1384_v18, %v2924_v11 }
 0x998   :  { %v1390_v3 = vmul.f32 %v1389_v0, %v2924_v11 }
 0x99a   :  { %v1391_v54 = vpack.c.bf16 %v1390_v3, %v1390_v3 }
 0x99c   :  { %2114 = vmatmul.mubr.bf16.vlgmr.msra.gmra.mxu0 %v1391_v54 }
 0x99d   :  { %2118 = vmatpush3.bf16.msra.mxu0 %v2635_v14  ;;  %2133 = vmatprep.mubr.msk.bf16.mxu0 %vm2481_vm0, %v2480_v15 }
 0x99e   :  { %2119 = vmatprep.subr.bf16.mxu0 %v2480_v15 }
 0x9a1   :  { %2120 = vmatpush3.bf16.msra.mxu0 %v2640_v16 }
 0x9a2   :  { %2121 = vmatprep.subr.bf16.mxu0 %v2480_v15 }
 0x9a5   :  { %2122 = vmatpush3.bf16.msra.mxu0 %v2644_v17 }
 0x9a6   :  { %2123 = vmatprep.subr.bf16.mxu0 %v2480_v15 }
 0x9a9   :  { %2124 = vmatpush3.bf16.msra.mxu0 %v2649_v19 }
 0x9aa   :  { %2125 = vmatprep.subr.bf16.mxu0 %v2480_v15 }
 0x9ad   :  { %2126 = vmatpush3.bf16.msra.mxu0 %v2656_v21 }
 0x9ae   :  { %2127 = vmatprep.subr.bf16.mxu0 %v2480_v15 }
 0x9b1   :  { %2128 = vmatpush3.bf16.msra.mxu0 %v2660_v22 }
 0x9b2   :  { %2129 = vmatprep.subr.bf16.mxu0 %v2480_v15 }
 0x9b5   :  { %2130 = vmatpush3.bf16.msra.mxu0 %v2664_v23 }
 0x9b6   :  { %2131 = vmatprep.subr.bf16.mxu0 %v2480_v15 }
 0x9b9   :  { %2132 = vmatpush3.bf16.msra.mxu0 %v2668_v24 }
 0x9ba   :  { %2137 = vmatprep.subr.bf16.mxu0 %v2480_v15 }
 0xa5c   :  { %v1426_v7 = vpop.f32.mrf.mxu0 }
 0xa5d   :  { %v1432_v31 = vadd.f32 %v1426_v7, %v2690_v60  ;;  %v2334_v60 = vld [vmem:[#allocation8 + $0x24] ss:$8 sps:$4 sm:$0xff]  }
 0xa5e   :  { %v2115_v34 = vpop.f32.mrf.mxu0 }
 0xa5f   :  { %2318 = vtanh.f32 %v1432_v31 }
 0xa60   :  { %v1429_v57 = vpop.f32.mrf.mxu0 }
 0xa61   :  { %v2303_v57 = vld [vmem:[#allocation11 + $0x20] sm:$0xff]  }
 0xa62   :  { %v2116_v46 = vpop.f32.mrf.mxu0 }
 0xa63   :  { %v2307_v46 = vld [vmem:[#allocation11] sm:$0xff]  }
 0xa6c   :  { %v2319_v25 = vpop.eup %2318 }
 0xa6d   :  { %v1436_v51 = vmul.f32 %v2319_v25, %v1435_v8 }
 0xa6f   :  { %v2986_v55 = vadd.f32 %v1436_v51, %v1434_v27 }
 0xa71   :  { %v1444_v13 = vpack.c.bf16 %v2986_v55, %v2986_v55 }
 0xa73   :  { %1478 = vmatmul.mubr.bf16.vlgmr.msra.gmra.mxu1 %v1444_v13 }
 0xa74   :  { %1552 = vmatpush1.bf16.msra.mxu1 %v2928_v33  ;;  %1583 = vmatprep.mubr.bf16.mxu1 %v3052_v30  ;;  %v2336_v30 = vld [vmem:[#allocation8 + $0x14] ss:$8 sps:$4 sm:$0xff]  }
 0xa75   :  { %1553 = vmatprep.subr.bf16.mxu1 %v2932_v53 }
 0xa78   :  { %1554 = vmatpush1.bf16.msra.mxu1 %v2935_v29 }
 0xa79   :  { %1555 = vmatprep.subr.bf16.mxu1 %v2938_v10 }
 0xa7c   :  { %1556 = vmatpush1.bf16.msra.mxu1 %v2941_v36 }
 0xa7d   :  { %1557 = vmatprep.subr.bf16.mxu1 %v2944_v43 }
 0xa80   :  { %1558 = vmatpush1.bf16.msra.mxu1 %v2947_v12 }
 0xa81   :  { %1559 = vmatprep.subr.bf16.mxu1 %v2950_v40 }
 0xa84   :  { %1560 = vmatpush1.bf16.msra.mxu1 %v2953_v48 }
 0xa85   :  { %1561 = vmatprep.subr.bf16.mxu1 %v2334_v60 }
 0xa88   :  { %1562 = vmatpush1.bf16.msra.mxu1 %v2335_v56 }
 0xa89   :  { %1563 = vmatprep.subr.bf16.mxu1 %v2336_v30 }
 0xa8c   :  { %1564 = vmatpush1.bf16.msra.mxu1 %v2337_v58 }
 0xa8d   :  { %1565 = vmatprep.subr.bf16.mxu1 %v2338_v61 }
 0xa90   :  { %1566 = vmatpush1.bf16.msra.mxu1 %v2339_v1 }
 0xa91   :  { %2157 = vmatprep.subr.bf16.mxu1 %v2480_v15 }
 0xb33   :  { %v1479_v35 = vpop.f32.mrf.mxu1 }
 0xb34   :  { %v1486_v63 = vadd.f32 %v1479_v35, %v2740_v38 }
 0xb35   :  { %v1481_v6 = vpop.f32.mrf.mxu1 }
 0xb36   :  { %v1491_v2 = vadd.f32 %v1481_v6, %v2744_v45 }
 0xb37   :  { %v1483_v11 = vpop.f32.mrf.mxu1 }
 0xb38   :  { %v1492_v26 = vmul.f32 0.16666667, %v1491_v2 }
 0xb39   :  { %v1484_v33 = vpop.f32.mrf.mxu1 }
 0xb3a   :  { %v1493_v53 = vadd.f32 0.5, %v1492_v26 }
 0xb3c   :  { %v1494_v29 = vmax.f32 %v1493_v53, 0.0 }
 0xb3e   :  { %v1495_v10 = vmin.f32 %v1494_v29, 1.0 }
 0xb40   :  { %v1496_v36 = vmul.f32 %v1495_v10, %v2986_v55 }
 0xb42   :  { %v1497_v43 = vpack.c.bf16 %v1496_v36, %v1496_v36 }
 0xb44   :  { %2134 = vmatmul.mubr.bf16.vlgmr.msra.gmra.mxu0 %v1497_v43 }
 0xb45   :  { %2138 = vmatpush3.bf16.msra.mxu0 %v2635_v14  ;;  %2153 = vmatprep.mubr.msk.bf16.mxu0 %vm2481_vm0, %v2480_v15  ;;  %v1487_v14 = vmul.f32 0.16666667, %v1486_v63 }
 0xb46   :  { %2139 = vmatprep.subr.bf16.mxu0 %v2480_v15 }
 0xb47   :  { %v1488_v38 = vadd.f32 0.5, %v1487_v14 }
 0xb49   :  { %2140 = vmatpush3.bf16.msra.mxu0 %v2640_v16  ;;  %v1489_v12 = vmax.f32 %v1488_v38, 0.0 }
 0xb4a   :  { %2141 = vmatprep.subr.bf16.mxu0 %v2480_v15 }
 0xb4b   :  { %v1490_v40 = vmin.f32 %v1489_v12, 1.0 }
 0xb4d   :  { %2142 = vmatpush3.bf16.msra.mxu0 %v2644_v17  ;;  %v1540_v41 = vmul.f32 %v1490_v40, %v2986_v55 }
 0xb4e   :  { %2143 = vmatprep.subr.bf16.mxu0 %v2480_v15 }
 0xb51   :  { %2144 = vmatpush3.bf16.msra.mxu0 %v2649_v19 }
 0xb52   :  { %2145 = vmatprep.subr.bf16.mxu0 %v2480_v15 }
 0xb55   :  { %2146 = vmatpush3.bf16.msra.mxu0 %v2656_v21 }
 0xb56   :  { %2147 = vmatprep.subr.bf16.mxu0 %v2480_v15 }
 0xb59   :  { %2148 = vmatpush3.bf16.msra.mxu0 %v2660_v22  ;;  %v1541_v22 = vsub.f32 1.0, %v1490_v40 }
 0xb5a   :  { %2149 = vmatprep.subr.bf16.mxu0 %v2480_v15 }
 0xb5d   :  { %2150 = vmatpush3.bf16.msra.mxu0 %v2664_v23 }
 0xb5e   :  { %2151 = vmatprep.subr.bf16.mxu0 %v2480_v15 }
 0xb61   :  { %2152 = vmatpush3.bf16.msra.mxu0 %v2668_v24  ;;  %v2300_v24 = vld [vmem:[#allocation11 + $0x38] sm:$0xff]  }
 0xc04   :  { %v1532_v16 = vpop.f32.mrf.mxu0 }
 0xc05   :  { %v1538_v17 = vadd.f32 %v1532_v16, %v2694_v4  ;;  %v2301_v4 = vld [vmem:[#allocation11 + $0x30] sm:$0xff]  }
 0xc06   :  { %v2135_v19 = vpop.f32.mrf.mxu0 }
 0xc07   :  { %2320 = vtanh.f32 %v1538_v17 }
 0xc08   :  { %v1535_v21 = vpop.f32.mrf.mxu0 }
 0xc0a   :  { %v2136_v45 = vpop.f32.mrf.mxu0 }
 0xc14   :  { %v2321_v48 = vpop.eup %2320 }
 0xc15   :  { %v1542_v23 = vmul.f32 %v2321_v48, %v1541_v22 }
 0xc17   :  { %v1543_v39 = vadd.f32 %v1542_v23, %v1540_v41 }
 0xc19   :  { %v1550_v42 = vpack.c.bf16 %v1543_v39, %v1543_v39 }
 0xc1b   :  { %1584 = vmatmul.mubr.bf16.vlgmr.msra.gmra.mxu1 %v1550_v42 }
 0xc1c   :  { %2173 = vmatprep.mubr.msk.bf16.mxu1 %vm2481_vm0, %v2480_v15  ;;  %2158 = vmatpush3.bf16.msra.mxu1 %v2300_v24 }
 0xc1d   :  { %2159 = vmatprep.subr.bf16.mxu1 %v2480_v15 }
 0xc20   :  { %2160 = vmatpush3.bf16.msra.mxu1 %v2301_v4 }
 0xc21   :  { %2161 = vmatprep.subr.bf16.mxu1 %v2480_v15 }
 0xc24   :  { %2162 = vmatpush3.bf16.msra.mxu1 %v2302_v37 }
 0xc25   :  { %2163 = vmatprep.subr.bf16.mxu1 %v2480_v15 }
 0xc28   :  { %2164 = vmatpush3.bf16.msra.mxu1 %v2303_v57 }
 0xc29   :  { %2165 = vmatprep.subr.bf16.mxu1 %v2480_v15 }
 0xc2c   :  { %2166 = vmatpush3.bf16.msra.mxu1 %v2304_v9 }
 0xc2d   :  { %2167 = vmatprep.subr.bf16.mxu1 %v2480_v15 }
 0xcdb   :  { %v1585_v44 = vpop.f32.mrf.mxu1 }
 0xcdc   :  { %v1592_v59 = vadd.f32 %v1585_v44, %v2748_v50  ;;  %v2305_v50 = vld [vmem:[#allocation11 + $0x10] sm:$0xff]  }
 0xcdd   :  { %v1587_v49 = vpop.f32.mrf.mxu1  ;;  %2168 = vmatpush3.bf16.msra.mxu1 %v2305_v50 }
 0xcde   :  { %v1597_v62 = vadd.f32 %v1587_v49, %v552_v47  ;;  %2169 = vmatprep.subr.bf16.mxu1 %v2480_v15  ;;  %v1593_v32 = vmul.f32 0.16666667, %v1592_v59 }
 0xcdf   :  { %v1589_v52 = vpop.f32.mrf.mxu1 }
 0xce0   :  { %v1598_v0 = vmul.f32 0.16666667, %v1597_v62  ;;  %v1594_v27 = vadd.f32 0.5, %v1593_v32 }
 0xce1   :  { %v1590_v3 = vpop.f32.mrf.mxu1  ;;  %2170 = vmatpush3.bf16.msra.mxu1 %v2306_v20 }
 0xce2   :  { %v1599_v54 = vadd.f32 0.5, %v1598_v0  ;;  %2171 = vmatprep.subr.bf16.mxu1 %v2480_v15  ;;  %v1595_v13 = vmax.f32 %v1594_v27, 0.0  ;;  %v1867_v15 = vld [vmem:[%s3048_s6] ss:$0 sm:$0xff] }
 0xce4   :  { %v1600_v5 = vmax.f32 %v1599_v54, 0.0  ;;  %v1596_v60 = vmin.f32 %v1595_v13, 1.0 }
 0xce5   :  { %2172 = vmatpush3.bf16.msra.mxu1 %v2307_v46 }
 0xce6   :  { %v1601_v7 = vmin.f32 %v1600_v5, 1.0  ;;  %v1647_v56 = vsub.f32 1.0, %v1596_v60  ;;  %v1646_v58 = vmul.f32 %v1596_v60, %v1543_v39 }
 0xce8   :  { %v1602_v31 = vmul.f32 %v1601_v7, %v1543_v39 }
 0xcea   :  { %v1603_v34 = vpack.c.bf16 %v1602_v31, %v1602_v31 }
 0xcec   :  { %2154 = vmatmul.mubr.bf16.vlgmr.msra.gmra.mxu0 %v1603_v34 }
 0xdac   :  { %v1638_v18 = vpop.f32.mrf.mxu0 }
 0xdad   :  { %v1644_v8 = vadd.f32 %v1638_v18, %v2701_v28 }
 0xdae   :  { %v2155_v25 = vpop.f32.mrf.mxu0 }
 0xdaf   :  { %2322 = vtanh.f32 %v1644_v8 }
 0xdb0   :  { %v1641_v51 = vpop.f32.mrf.mxu0 }
 0xdb2   :  { %v2156_v55 = vpop.f32.mrf.mxu0 }
 0xdbc   :  { %v2323_v30 = vpop.eup %2322 }
 0xdbd   :  { %v1648_v61 = vmul.f32 %v2323_v30, %v1647_v56 }
 0xdbf   :  { %v1649_v1 = vadd.f32 %v1648_v61, %v1646_v58 }
 0xdc1   :  { %v1650_v35 = vpack.c.bf16 %v1649_v1, %v1649_v1 }
 0xdc3   :  { %2174 = vmatmul.mubr.bf16.vlgmr.msra.gmra.mxu1 %v1650_v35 }
 0xe83   :  { %v1756_v28 = vpop.f32.mrf.mxu1 }
 0xe84   :  { %v1757_v63 = vadd.f32 %v1867_v15, %v1756_v28 }
 0xe85   :  { %v2175_v6 = vpop.f32.mrf.mxu1 }
 0xe86   :  { %1762 = vst [vmem:[#allocation12] sm:$0xff] %v1757_v63 }
 0xe87   :  { %v1759_v2 = vpop.f32.mrf.mxu1 }
 0xe88   :  { %2451 = shalt.err (!%p2448_p1)
}
 0xe89   :  { %1772 = dma.vmem_to_hbm [thread:$0]  %s1770_s8, 128, %s3049_s7, [#allocation5]   ;;  %v2176_v11 = vpop.f32.mrf.mxu1 }
 0xe8a   :  { %2466 = dma.done.wait [#allocation5], 128  }
 0xe8b   :  { %2467 = vsyncadd [#allocation5], 4294967168 }
 0xe8c   :  { %1776 = vsyncpa [#allocation4], 1 }
 0xe8d   :  { %1777 = vsyncpa [#allocation7], 1 }
 0xe8e   :  { %1778 = vsyncpa [#allocation10], 1 }
 0xe8f   :  { %1779 = vsyncpa [#allocation5], 1 }

</bundles_post_ra>
